<compile_context>
chip_gen: v6e
topology: v6e:2x2x1
jax: 0.10.0
libtpu: 0.0.40
codegen_flags: <defaults>
</compile_context>

<pallas_src>
import numpy as np

import jax
import jax.numpy as jnp
from jax.experimental import pallas as pl
from jax.experimental.pallas import tpu as pltpu

# lane-shift deltas (over the 8x8 coarse grid flattened as mh*8+nw)
_S2_DELTAS = tuple(A * 8 + C for A in range(3) for C in range(3))   # conv2 taps
_FC1_DELTAS = tuple(m * 8 + n for m in range(5) for n in range(5))  # fc1 5x5 window


def _shifted_stack(act, deltas, lanes):
    """Row-group g of the result reads act[:, l + deltas[g]] (lane roll, wrap
    lands only in lanes that are dead downstream)."""
    parts = [act if d == 0 else pltpu.roll(act, lanes - d, axis=1) for d in deltas]
    return jnp.concatenate(parts, axis=0)


# ----------------------------------------------------------------------------
# Fused kernel: conv1+relu+pool1 -> conv2+relu+pool2 -> fc1 -> fc2 -> fc3
# ----------------------------------------------------------------------------
def _lenet_kernel(x4e_ref, w1e_ref, b1_ref, w2e_ref, b2_ref,
                  m1_ref, bf1_ref, m2_ref, bf2_ref, m3_ref, bf3_ref, out_ref):
    lanes = x4e_ref.shape[1]   # lane tile (whole 64-lane batch blocks)

    # ---- conv1 (1->6, 5x5) + 2x2 max-pool + bias + ReLU: one bf16 MXU matmul.
    # x4e rows = 4 pre-shifted copies (host-side) of the 16 mod-4 parity planes.
    c1 = jnp.dot(w1e_ref[...], x4e_ref[...], preferred_element_type=jnp.float32)  # [96, T]
    c1 = jnp.maximum(jnp.maximum(c1[0:24], c1[24:48]),
                     jnp.maximum(c1[48:72], c1[72:96]))                            # pool 2x2
    pool1 = jnp.maximum(c1 + b1_ref[...], 0.0)                                     # [24, T] f32

    # ---- conv2 (6->16, 5x5) + pool: 9 XLU lane-rolls -> one bf16 MXU matmul.
    sp2 = _shifted_stack(pool1, _S2_DELTAS, lanes).astype(jnp.bfloat16)            # [216, T]
    c2 = jnp.dot(w2e_ref[...], sp2, preferred_element_type=jnp.float32)            # [64, T]
    c2 = jnp.maximum(jnp.maximum(c2[0:16], c2[16:32]),
                     jnp.maximum(c2[32:48], c2[48:64]))                            # pool 2x2
    act2 = jnp.maximum(c2 + b2_ref[...], 0.0)                                      # [16, T] f32

    # ---- fc1 as a 5x5 "valid conv" over the 8x8 lane grid: consumes act2's
    # native layout (no relayout loop, fully dense weight); the per-batch
    # answer lives in lane b*64.  fc2/fc3 stay in the same lane layout.
    sp3 = _shifted_stack(act2, _FC1_DELTAS, lanes).astype(jnp.bfloat16)            # [400, T]
    h1 = jnp.maximum(
        jnp.dot(m1_ref[...], sp3, preferred_element_type=jnp.float32)
        + bf1_ref[...], 0.0)                                                       # [120, T]
    h2 = jnp.maximum(
        jnp.dot(m2_ref[...], h1.astype(jnp.bfloat16),
                preferred_element_type=jnp.float32) + bf2_ref[...], 0.0)           # [84, T]
    out_ref[...] = (jnp.dot(m3_ref[...], h2.astype(jnp.bfloat16),
                            preferred_element_type=jnp.float32)
                    + bf3_ref[...]).astype(out_ref.dtype)                          # [10, T]


# ----------------------------------------------------------------------------
# Host-side (XLA) glue: mod-4 space-to-depth with the 4 conv1 tap shifts baked in
# ----------------------------------------------------------------------------
def _space_to_depth4(img):               # (B, 32, 32) -> (16, B*64)
    B = img.shape[0]
    return img.reshape(B, 8, 4, 8, 4).transpose(2, 4, 0, 1, 3).reshape(16, B * 64)


def _expand_conv1_input(x):              # (B, 1, 32, 32) -> (64, B*64) bf16
    xp = jnp.pad(x[:, 0].astype(jnp.float32), ((0, 0), (0, 4), (0, 4)))
    parts = [_space_to_depth4(xp[:, 4 * A:4 * A + 32, 4 * C:4 * C + 32])
             for A in (0, 1) for C in (0, 1)]
    return jnp.concatenate(parts, axis=0).astype(jnp.bfloat16)


# ----------------------------------------------------------------------------
# Forward wrapper: one pallas_call, lane-axis grid marked "parallel"
# ----------------------------------------------------------------------------
def net_forward(prep, x):
    B = x.shape[0]
    lanes = B * 64
    x4e = _expand_conv1_input(x)                      # (64, B*64) bf16

    # lane tile = whole 64-lane batch blocks, 128-multiple when possible
    if lanes % 512 == 0:
        lane_tile = 512
    elif lanes % 256 == 0:
        lane_tile = 256
    elif lanes % 128 == 0:
        lane_tile = 128
    else:
        lane_tile = lanes
    grid = (lanes // lane_tile,)

    def _full(shape):                                  # weight stays VMEM-resident
        return pl.BlockSpec(shape, lambda t: (0, 0))

    flops = 2 * lanes * (96 * 64 + 64 * 216 + 120 * 400 + 84 * 120 + 10 * 84)
    bytes_accessed = (2 * 64 * lanes + 4 * 10 * lanes
                      + 2 * (96 * 64 + 64 * 216 + 120 * 400 + 84 * 120 + 10 * 84)
                      + 4 * (24 + 16 + 120 + 84 + 10))

    logits = pl.pallas_call(
        _lenet_kernel,
        out_shape=jax.ShapeDtypeStruct((10, lanes), jnp.float32),
        grid=grid,
        in_specs=[
            pl.BlockSpec((64, lane_tile), lambda t: (0, t)),   # x4e
            _full((96, 64)), _full((24, 1)),                   # conv1 w/b
            _full((64, 216)), _full((16, 1)),                  # conv2 w/b
            _full((120, 400)), _full((120, 1)),                # fc1 w/b
            _full((84, 120)), _full((84, 1)),                  # fc2 w/b
            _full((10, 84)), _full((10, 1)),                   # fc3 w/b
        ],
        out_specs=pl.BlockSpec((10, lane_tile), lambda t: (0, t)),
        compiler_params=pltpu.CompilerParams(
            dimension_semantics=("parallel",)),
        cost_estimate=pl.CostEstimate(
            flops=flops, transcendentals=0, bytes_accessed=bytes_accessed),
    )(x4e, prep["w1exp"], prep["b1row"], prep["w2exp"], prep["b2row"],
      prep["m1c"], prep["bf1"], prep["m2"], prep["bf2"], prep["m3"], prep["bf3"])

    # valid logits live in lane b*64 of the [10, B*64] plane layout
    return logits[:, ::64].T


# ----------------------------------------------------------------------------
# One-time weight preparation (at init, NOT on the forward path)
# ----------------------------------------------------------------------------
def prepare_params(params):
    w1 = params["conv1_w"]   # (6, 1, 5, 5)
    b1 = params["conv1_b"]   # (6,)
    w2 = params["conv2_w"]   # (16, 6, 5, 5)
    b2 = params["conv2_b"]   # (16,)

    # conv1 expanded weights: rows (p, q, c, r2, s2) [96], cols (A, C, r4, s4) [64]
    r_idx, c_idx, cc, ii, jj = [], [], [], [], []
    for p in range(2):
        for q in range(2):
            for c in range(6):
                for r2 in range(2):
                    for s2 in range(2):
                        row = (p * 2 + q) * 24 + c * 4 + r2 * 2 + s2
                        for A in range(2):
                            for C in range(2):
                                for r4 in range(4):
                                    for s4 in range(4):
                                        i = 4 * A + r4 - 2 * r2 - p
                                        j = 4 * C + s4 - 2 * s2 - q
                                        if 0 <= i < 5 and 0 <= j < 5:
                                            r_idx.append(row)
                                            c_idx.append((A * 2 + C) * 16 + r4 * 4 + s4)
                                            cc.append(c); ii.append(i); jj.append(j)
    w1exp = jnp.zeros((96, 64), jnp.float32).at[
        np.asarray(r_idx), np.asarray(c_idx)].set(
        w1[np.asarray(cc), 0, np.asarray(ii), np.asarray(jj)]).astype(jnp.bfloat16)

    # conv2 expanded weights: rows (p, q, co) [64], cols (a, c2, ci, r2, s2) [216]
    r_idx, c_idx, co_s, ci_s, ii, jj = [], [], [], [], [], []
    for p in range(2):
        for q in range(2):
            for co in range(16):
                row = (p * 2 + q) * 16 + co
                for a in range(3):
                    for c2 in range(3):
                        for ci in range(6):
                            for r2 in range(2):
                                for s2 in range(2):
                                    i = 2 * a + r2 - p
                                    j = 2 * c2 + s2 - q
                                    if 0 <= i < 5 and 0 <= j < 5:
                                        r_idx.append(row)
                                        c_idx.append((a * 3 + c2) * 24 + ci * 4 + r2 * 2 + s2)
                                        co_s.append(co); ci_s.append(ci)
                                        ii.append(i); jj.append(j)
    w2exp = jnp.zeros((64, 216), jnp.float32).at[
        np.asarray(r_idx), np.asarray(c_idx)].set(
        w2[np.asarray(co_s), np.asarray(ci_s), np.asarray(ii), np.asarray(jj)]
    ).astype(jnp.bfloat16)

    # fc1 weight re-ordered for the 5x5 lane-window form: col = (mh*5+nw)*16 + co
    m1c = (params["fc1_w"].reshape(120, 16, 5, 5)
           .transpose(0, 2, 3, 1).reshape(120, 400).astype(jnp.bfloat16))

    return {
        "w1exp": w1exp,
        "b1row": jnp.repeat(b1, 4).reshape(24, 1).astype(jnp.float32),
        "w2exp": w2exp,
        "b2row": b2.reshape(16, 1).astype(jnp.float32),
        "m1c": m1c,
        "bf1": params["fc1_b"].reshape(-1, 1).astype(jnp.float32),
        "m2": params["fc2_w"].astype(jnp.bfloat16),      # (84, 120), natural orientation
        "bf2": params["fc2_b"].reshape(-1, 1).astype(jnp.float32),
        "m3": params["fc3_w"].astype(jnp.bfloat16),      # (10, 84)
        "bf3": params["fc3_b"].reshape(-1, 1).astype(jnp.float32),
    }


# ----------------------------------------------------------------------------
# Parameters (deterministic, PyTorch-default-like uniform(-1/sqrt(fan_in), ...))
# ----------------------------------------------------------------------------
def init_params(key):
    def uni(k, shape, fan_in):
        bound = 1.0 / float(fan_in) ** 0.5
        return jax.random.uniform(k, shape, jnp.float32, -bound, bound)

    ks = jax.random.split(key, 10)
    return {
        "conv1_w": uni(ks[0], (6, 1, 5, 5), 1 * 25),
        "conv1_b": uni(ks[1], (6,), 1 * 25),
        "conv2_w": uni(ks[2], (16, 6, 5, 5), 6 * 25),
        "conv2_b": uni(ks[3], (16,), 6 * 25),
        "fc1_w": uni(ks[4], (120, 400), 400),
        "fc1_b": uni(ks[5], (120,), 400),
        "fc2_w": uni(ks[6], (84, 120), 120),
        "fc2_b": uni(ks[7], (84,), 120),
        "fc3_w": uni(ks[8], (10, 84), 84),
        "fc3_b": uni(ks[9], (10,), 84),
    }


# ----------------------------------------------------------------------------
# Plain-JAX reference for validation
# ----------------------------------------------------------------------------
def net_forward_ref(params, x):
    def conv(x, w, b):
        y = jax.lax.conv_general_dilated(
            x, w, (1, 1), "VALID", dimension_numbers=("NCHW", "OIHW", "NCHW"))
        return jax.nn.relu(y + b.reshape(1, -1, 1, 1))

    def pool(x):
        return jax.lax.reduce_window(
            x, -jnp.inf, jax.lax.max, (1, 1, 2, 2), (1, 1, 2, 2), "VALID")

    x = pool(conv(x, params["conv1_w"], params["conv1_b"]))
    x = pool(conv(x, params["conv2_w"], params["conv2_b"]))
    x = x.reshape(x.shape[0], -1)
    x = jax.nn.relu(x @ params["fc1_w"].T + params["fc1_b"])
    x = jax.nn.relu(x @ params["fc2_w"].T + params["fc2_b"])
    return x @ params["fc3_w"].T + params["fc3_b"]


if __name__ == "__main__":
    key = jax.random.PRNGKey(0)
    pkey, xkey = jax.random.split(key)
    params = init_params(pkey)
    prep = prepare_params(params)                               # one-time weight prep
    x = jax.random.normal(xkey, (2, 1, 32, 32), jnp.float32)    # NCHW, like PyTorch

    fwd = jax.jit(net_forward)
    out = jax.block_until_ready(fwd(prep, x))
    ref = jax.block_until_ready(net_forward_ref(params, x))

    assert out.shape == (2, 10), out.shape
    # tolerance accounts for bf16 MXU operands vs the f32 reference
    err = float(jnp.max(jnp.abs(out - ref)))
    assert jnp.allclose(out, ref, rtol=3e-2, atol=3e-2), err
    print("KERNEL_OK")
</pallas_src>

<mosaic_0001>
module attributes {stable_mosaic.version = 11 : i64} {
  func.func @_lenet_kernel(%arg0: i32, %arg1: memref<64x128xbf16, #tpu.memory_space<vmem>>, %arg2: memref<96x64xbf16, #tpu.memory_space<vmem>>, %arg3: memref<24x1xf32, #tpu.memory_space<vmem>>, %arg4: memref<64x216xbf16, #tpu.memory_space<vmem>>, %arg5: memref<16x1xf32, #tpu.memory_space<vmem>>, %arg6: memref<120x400xbf16, #tpu.memory_space<vmem>>, %arg7: memref<120x1xf32, #tpu.memory_space<vmem>>, %arg8: memref<84x120xbf16, #tpu.memory_space<vmem>>, %arg9: memref<84x1xf32, #tpu.memory_space<vmem>>, %arg10: memref<10x84xbf16, #tpu.memory_space<vmem>>, %arg11: memref<10x1xf32, #tpu.memory_space<vmem>>, %arg12: memref<10x128xf32, #tpu.memory_space<vmem>>) attributes {dimension_semantics = [#tpu.dimension_semantics<parallel>], iteration_bounds = array<i64: 1>, scalar_prefetch = 0 : i64, scratch_operands = 0 : i64, tpu.core_type = #tpu.core_type<tc>, window_params = [{transform_indices = @transform_0, window_bounds = array<i64: 64, 128>}, {pipeline_mode = #tpu.pipeline_mode<synchronous>, transform_indices = @transform_1, window_bounds = array<i64: 96, 64>}, {pipeline_mode = #tpu.pipeline_mode<synchronous>, transform_indices = @transform_2, window_bounds = array<i64: 24, 1>}, {pipeline_mode = #tpu.pipeline_mode<synchronous>, transform_indices = @transform_3, window_bounds = array<i64: 64, 216>}, {pipeline_mode = #tpu.pipeline_mode<synchronous>, transform_indices = @transform_4, window_bounds = array<i64: 16, 1>}, {pipeline_mode = #tpu.pipeline_mode<synchronous>, transform_indices = @transform_5, window_bounds = array<i64: 120, 400>}, {pipeline_mode = #tpu.pipeline_mode<synchronous>, transform_indices = @transform_6, window_bounds = array<i64: 120, 1>}, {pipeline_mode = #tpu.pipeline_mode<synchronous>, transform_indices = @transform_7, window_bounds = array<i64: 84, 120>}, {pipeline_mode = #tpu.pipeline_mode<synchronous>, transform_indices = @transform_8, window_bounds = array<i64: 84, 1>}, {pipeline_mode = #tpu.pipeline_mode<synchronous>, transform_indices = @transform_9, window_bounds = array<i64: 10, 84>}, {pipeline_mode = #tpu.pipeline_mode<synchronous>, transform_indices = @transform_10, window_bounds = array<i64: 10, 1>}, {transform_indices = @transform_11, window_bounds = array<i64: 10, 128>}]} {
    %c0 = arith.constant 0 : index
    %c0_0 = arith.constant 0 : index
    %0 = vector.load %arg2[%c0, %c0_0] : memref<96x64xbf16, #tpu.memory_space<vmem>>, vector<96x64xbf16>
    %c0_1 = arith.constant 0 : index
    %c0_2 = arith.constant 0 : index
    %1 = vector.load %arg1[%c0_1, %c0_2] : memref<64x128xbf16, #tpu.memory_space<vmem>>, vector<64x128xbf16>
    %cst = arith.constant dense<0.000000e+00> : vector<96x128xf32>
    %2 = tpu.matmul %0, %1, %cst {dimension_numbers = #tpu.dot_dimension_numbers<[1], [0], [0], [1], [0, 0, 1, 1], [], []>} : vector<96x64xbf16>, vector<64x128xbf16>, vector<96x128xf32> -> vector<96x128xf32>
    %3 = vector.extract_strided_slice %2 {offsets = [0, 0], sizes = [24, 128], strides = [1, 1]} : vector<96x128xf32> to vector<24x128xf32>
    %4 = vector.extract_strided_slice %2 {offsets = [24, 0], sizes = [24, 128], strides = [1, 1]} : vector<96x128xf32> to vector<24x128xf32>
    %5 = arith.maximumf %3, %4 : vector<24x128xf32>
    %6 = vector.extract_strided_slice %2 {offsets = [48, 0], sizes = [24, 128], strides = [1, 1]} : vector<96x128xf32> to vector<24x128xf32>
    %7 = vector.extract_strided_slice %2 {offsets = [72, 0], sizes = [24, 128], strides = [1, 1]} : vector<96x128xf32> to vector<24x128xf32>
    %8 = arith.maximumf %6, %7 : vector<24x128xf32>
    %9 = arith.maximumf %5, %8 : vector<24x128xf32>
    %c0_3 = arith.constant 0 : index
    %c0_4 = arith.constant 0 : index
    %10 = vector.load %arg3[%c0_3, %c0_4] : memref<24x1xf32, #tpu.memory_space<vmem>>, vector<24x1xf32>
    %11 = vector.broadcast %10 : vector<24x1xf32> to vector<24x128xf32>
    %12 = arith.addf %9, %11 : vector<24x128xf32>
    %cst_5 = arith.constant 0.000000e+00 : f32
    %13 = vector.broadcast %cst_5 : f32 to vector<24x128xf32>
    %14 = arith.maximumf %12, %13 : vector<24x128xf32>
    %c127_i32 = arith.constant 127 : i32
    %15 = tpu.dynamic_rotate %14 by %c127_i32 dim 1 : vector<24x128xf32>, i32 -> vector<24x128xf32>
    %c126_i32 = arith.constant 126 : i32
    %16 = tpu.dynamic_rotate %14 by %c126_i32 dim 1 : vector<24x128xf32>, i32 -> vector<24x128xf32>
    %c120_i32 = arith.constant 120 : i32
    %17 = tpu.dynamic_rotate %14 by %c120_i32 dim 1 : vector<24x128xf32>, i32 -> vector<24x128xf32>
    %c119_i32 = arith.constant 119 : i32
    %18 = tpu.dynamic_rotate %14 by %c119_i32 dim 1 : vector<24x128xf32>, i32 -> vector<24x128xf32>
    %c118_i32 = arith.constant 118 : i32
    %19 = tpu.dynamic_rotate %14 by %c118_i32 dim 1 : vector<24x128xf32>, i32 -> vector<24x128xf32>
    %c112_i32 = arith.constant 112 : i32
    %20 = tpu.dynamic_rotate %14 by %c112_i32 dim 1 : vector<24x128xf32>, i32 -> vector<24x128xf32>
    %c111_i32 = arith.constant 111 : i32
    %21 = tpu.dynamic_rotate %14 by %c111_i32 dim 1 : vector<24x128xf32>, i32 -> vector<24x128xf32>
    %c110_i32 = arith.constant 110 : i32
    %22 = tpu.dynamic_rotate %14 by %c110_i32 dim 1 : vector<24x128xf32>, i32 -> vector<24x128xf32>
    %23 = tpu.concatenate %14, %15, %16, %17, %18, %19, %20, %21, %22 in 0 : vector<24x128xf32>, vector<24x128xf32>, vector<24x128xf32>, vector<24x128xf32>, vector<24x128xf32>, vector<24x128xf32>, vector<24x128xf32>, vector<24x128xf32>, vector<24x128xf32> -> vector<216x128xf32>
    %24 = arith.truncf %23 : vector<216x128xf32> to vector<216x128xbf16>
    %c0_6 = arith.constant 0 : index
    %c0_7 = arith.constant 0 : index
    %25 = vector.load %arg4[%c0_6, %c0_7] : memref<64x216xbf16, #tpu.memory_space<vmem>>, vector<64x216xbf16>
    %cst_8 = arith.constant dense<0.000000e+00> : vector<64x128xf32>
    %26 = tpu.matmul %25, %24, %cst_8 {dimension_numbers = #tpu.dot_dimension_numbers<[1], [0], [0], [1], [0, 0, 1, 1], [], []>} : vector<64x216xbf16>, vector<216x128xbf16>, vector<64x128xf32> -> vector<64x128xf32>
    %27 = vector.extract_strided_slice %26 {offsets = [0, 0], sizes = [16, 128], strides = [1, 1]} : vector<64x128xf32> to vector<16x128xf32>
    %28 = vector.extract_strided_slice %26 {offsets = [16, 0], sizes = [16, 128], strides = [1, 1]} : vector<64x128xf32> to vector<16x128xf32>
    %29 = arith.maximumf %27, %28 : vector<16x128xf32>
    %30 = vector.extract_strided_slice %26 {offsets = [32, 0], sizes = [16, 128], strides = [1, 1]} : vector<64x128xf32> to vector<16x128xf32>
    %31 = vector.extract_strided_slice %26 {offsets = [48, 0], sizes = [16, 128], strides = [1, 1]} : vector<64x128xf32> to vector<16x128xf32>
    %32 = arith.maximumf %30, %31 : vector<16x128xf32>
    %33 = arith.maximumf %29, %32 : vector<16x128xf32>
    %c0_9 = arith.constant 0 : index
    %c0_10 = arith.constant 0 : index
    %34 = vector.load %arg5[%c0_9, %c0_10] : memref<16x1xf32, #tpu.memory_space<vmem>>, vector<16x1xf32>
    %35 = vector.broadcast %34 : vector<16x1xf32> to vector<16x128xf32>
    %36 = arith.addf %33, %35 : vector<16x128xf32>
    %cst_11 = arith.constant 0.000000e+00 : f32
    %37 = vector.broadcast %cst_11 : f32 to vector<16x128xf32>
    %38 = arith.maximumf %36, %37 : vector<16x128xf32>
    %c127_i32_12 = arith.constant 127 : i32
    %39 = tpu.dynamic_rotate %38 by %c127_i32_12 dim 1 : vector<16x128xf32>, i32 -> vector<16x128xf32>
    %c126_i32_13 = arith.constant 126 : i32
    %40 = tpu.dynamic_rotate %38 by %c126_i32_13 dim 1 : vector<16x128xf32>, i32 -> vector<16x128xf32>
    %c125_i32 = arith.constant 125 : i32
    %41 = tpu.dynamic_rotate %38 by %c125_i32 dim 1 : vector<16x128xf32>, i32 -> vector<16x128xf32>
    %c124_i32 = arith.constant 124 : i32
    %42 = tpu.dynamic_rotate %38 by %c124_i32 dim 1 : vector<16x128xf32>, i32 -> vector<16x128xf32>
    %c120_i32_14 = arith.constant 120 : i32
    %43 = tpu.dynamic_rotate %38 by %c120_i32_14 dim 1 : vector<16x128xf32>, i32 -> vector<16x128xf32>
    %c119_i32_15 = arith.constant 119 : i32
    %44 = tpu.dynamic_rotate %38 by %c119_i32_15 dim 1 : vector<16x128xf32>, i32 -> vector<16x128xf32>
    %c118_i32_16 = arith.constant 118 : i32
    %45 = tpu.dynamic_rotate %38 by %c118_i32_16 dim 1 : vector<16x128xf32>, i32 -> vector<16x128xf32>
    %c117_i32 = arith.constant 117 : i32
    %46 = tpu.dynamic_rotate %38 by %c117_i32 dim 1 : vector<16x128xf32>, i32 -> vector<16x128xf32>
    %c116_i32 = arith.constant 116 : i32
    %47 = tpu.dynamic_rotate %38 by %c116_i32 dim 1 : vector<16x128xf32>, i32 -> vector<16x128xf32>
    %c112_i32_17 = arith.constant 112 : i32
    %48 = tpu.dynamic_rotate %38 by %c112_i32_17 dim 1 : vector<16x128xf32>, i32 -> vector<16x128xf32>
    %c111_i32_18 = arith.constant 111 : i32
    %49 = tpu.dynamic_rotate %38 by %c111_i32_18 dim 1 : vector<16x128xf32>, i32 -> vector<16x128xf32>
    %c110_i32_19 = arith.constant 110 : i32
    %50 = tpu.dynamic_rotate %38 by %c110_i32_19 dim 1 : vector<16x128xf32>, i32 -> vector<16x128xf32>
    %c109_i32 = arith.constant 109 : i32
    %51 = tpu.dynamic_rotate %38 by %c109_i32 dim 1 : vector<16x128xf32>, i32 -> vector<16x128xf32>
    %c108_i32 = arith.constant 108 : i32
    %52 = tpu.dynamic_rotate %38 by %c108_i32 dim 1 : vector<16x128xf32>, i32 -> vector<16x128xf32>
    %c104_i32 = arith.constant 104 : i32
    %53 = tpu.dynamic_rotate %38 by %c104_i32 dim 1 : vector<16x128xf32>, i32 -> vector<16x128xf32>
    %c103_i32 = arith.constant 103 : i32
    %54 = tpu.dynamic_rotate %38 by %c103_i32 dim 1 : vector<16x128xf32>, i32 -> vector<16x128xf32>
    %c102_i32 = arith.constant 102 : i32
    %55 = tpu.dynamic_rotate %38 by %c102_i32 dim 1 : vector<16x128xf32>, i32 -> vector<16x128xf32>
    %c101_i32 = arith.constant 101 : i32
    %56 = tpu.dynamic_rotate %38 by %c101_i32 dim 1 : vector<16x128xf32>, i32 -> vector<16x128xf32>
    %c100_i32 = arith.constant 100 : i32
    %57 = tpu.dynamic_rotate %38 by %c100_i32 dim 1 : vector<16x128xf32>, i32 -> vector<16x128xf32>
    %c96_i32 = arith.constant 96 : i32
    %58 = tpu.dynamic_rotate %38 by %c96_i32 dim 1 : vector<16x128xf32>, i32 -> vector<16x128xf32>
    %c95_i32 = arith.constant 95 : i32
    %59 = tpu.dynamic_rotate %38 by %c95_i32 dim 1 : vector<16x128xf32>, i32 -> vector<16x128xf32>
    %c94_i32 = arith.constant 94 : i32
    %60 = tpu.dynamic_rotate %38 by %c94_i32 dim 1 : vector<16x128xf32>, i32 -> vector<16x128xf32>
    %c93_i32 = arith.constant 93 : i32
    %61 = tpu.dynamic_rotate %38 by %c93_i32 dim 1 : vector<16x128xf32>, i32 -> vector<16x128xf32>
    %c92_i32 = arith.constant 92 : i32
    %62 = tpu.dynamic_rotate %38 by %c92_i32 dim 1 : vector<16x128xf32>, i32 -> vector<16x128xf32>
    %63 = tpu.concatenate %38, %39, %40, %41, %42, %43, %44, %45, %46, %47, %48, %49, %50, %51, %52, %53 in 0 : vector<16x128xf32>, vector<16x128xf32>, vector<16x128xf32>, vector<16x128xf32>, vector<16x128xf32>, vector<16x128xf32>, vector<16x128xf32>, vector<16x128xf32>, vector<16x128xf32>, vector<16x128xf32>, vector<16x128xf32>, vector<16x128xf32>, vector<16x128xf32>, vector<16x128xf32>, vector<16x128xf32>, vector<16x128xf32> -> vector<256x128xf32>
    %64 = tpu.concatenate %54, %55, %56, %57, %58, %59, %60, %61, %62 in 0 : vector<16x128xf32>, vector<16x128xf32>, vector<16x128xf32>, vector<16x128xf32>, vector<16x128xf32>, vector<16x128xf32>, vector<16x128xf32>, vector<16x128xf32>, vector<16x128xf32> -> vector<144x128xf32>
    %65 = tpu.concatenate %63, %64 in 0 : vector<256x128xf32>, vector<144x128xf32> -> vector<400x128xf32>
    %66 = arith.truncf %65 : vector<400x128xf32> to vector<400x128xbf16>
    %c0_20 = arith.constant 0 : index
    %c0_21 = arith.constant 0 : index
    %67 = vector.load %arg6[%c0_20, %c0_21] : memref<120x400xbf16, #tpu.memory_space<vmem>>, vector<120x400xbf16>
    %cst_22 = arith.constant dense<0.000000e+00> : vector<120x128xf32>
    %68 = tpu.matmul %67, %66, %cst_22 {dimension_numbers = #tpu.dot_dimension_numbers<[1], [0], [0], [1], [0, 0, 1, 1], [], []>} : vector<120x400xbf16>, vector<400x128xbf16>, vector<120x128xf32> -> vector<120x128xf32>
    %c0_23 = arith.constant 0 : index
    %c0_24 = arith.constant 0 : index
    %69 = vector.load %arg7[%c0_23, %c0_24] : memref<120x1xf32, #tpu.memory_space<vmem>>, vector<120x1xf32>
    %70 = vector.broadcast %69 : vector<120x1xf32> to vector<120x128xf32>
    %71 = arith.addf %68, %70 : vector<120x128xf32>
    %cst_25 = arith.constant 0.000000e+00 : f32
    %72 = vector.broadcast %cst_25 : f32 to vector<120x128xf32>
    %73 = arith.maximumf %71, %72 : vector<120x128xf32>
    %c0_26 = arith.constant 0 : index
    %c0_27 = arith.constant 0 : index
    %74 = vector.load %arg8[%c0_26, %c0_27] : memref<84x120xbf16, #tpu.memory_space<vmem>>, vector<84x120xbf16>
    %75 = arith.truncf %73 : vector<120x128xf32> to vector<120x128xbf16>
    %cst_28 = arith.constant dense<0.000000e+00> : vector<84x128xf32>
    %76 = tpu.matmul %74, %75, %cst_28 {dimension_numbers = #tpu.dot_dimension_numbers<[1], [0], [0], [1], [0, 0, 1, 1], [], []>} : vector<84x120xbf16>, vector<120x128xbf16>, vector<84x128xf32> -> vector<84x128xf32>
    %c0_29 = arith.constant 0 : index
    %c0_30 = arith.constant 0 : index
    %77 = vector.load %arg9[%c0_29, %c0_30] : memref<84x1xf32, #tpu.memory_space<vmem>>, vector<84x1xf32>
    %78 = vector.broadcast %77 : vector<84x1xf32> to vector<84x128xf32>
    %79 = arith.addf %76, %78 : vector<84x128xf32>
    %cst_31 = arith.constant 0.000000e+00 : f32
    %80 = vector.broadcast %cst_31 : f32 to vector<84x128xf32>
    %81 = arith.maximumf %79, %80 : vector<84x128xf32>
    %c0_32 = arith.constant 0 : index
    %c0_33 = arith.constant 0 : index
    %82 = vector.load %arg10[%c0_32, %c0_33] : memref<10x84xbf16, #tpu.memory_space<vmem>>, vector<10x84xbf16>
    %83 = arith.truncf %81 : vector<84x128xf32> to vector<84x128xbf16>
    %cst_34 = arith.constant dense<0.000000e+00> : vector<10x128xf32>
    %84 = tpu.matmul %82, %83, %cst_34 {dimension_numbers = #tpu.dot_dimension_numbers<[1], [0], [0], [1], [0, 0, 1, 1], [], []>} : vector<10x84xbf16>, vector<84x128xbf16>, vector<10x128xf32> -> vector<10x128xf32>
    %c0_35 = arith.constant 0 : index
    %c0_36 = arith.constant 0 : index
    %85 = vector.load %arg11[%c0_35, %c0_36] : memref<10x1xf32, #tpu.memory_space<vmem>>, vector<10x1xf32>
    %86 = vector.broadcast %85 : vector<10x1xf32> to vector<10x128xf32>
    %87 = arith.addf %84, %86 : vector<10x128xf32>
    %c0_37 = arith.constant 0 : index
    %c0_38 = arith.constant 0 : index
    %88 = vector.load %arg12[%c0_37, %c0_38] : memref<10x128xf32, #tpu.memory_space<vmem>>, vector<10x128xf32>
    tpu.vector_store %arg12[%c0_37, %c0_38], %87 {strides = array<i32>} : memref<10x128xf32, #tpu.memory_space<vmem>>, vector<10x128xf32>,
    return
  }
  func.func @transform_0(%arg0: i32) -> (i32, i32) {
    %c0_i32 = arith.constant 0 : i32
    %c0_i32_0 = arith.constant 0 : i32
    return %c0_i32, %arg0 : i32, i32
  }
  func.func @transform_1(%arg0: i32) -> (i32, i32) {
    %c0_i32 = arith.constant 0 : i32
    %c0_i32_0 = arith.constant 0 : i32
    %c0_i32_1 = arith.constant 0 : i32
    return %c0_i32, %c0_i32_0 : i32, i32
  }
  func.func @transform_2(%arg0: i32) -> (i32, i32) {
    %c0_i32 = arith.constant 0 : i32
    %c0_i32_0 = arith.constant 0 : i32
    %c0_i32_1 = arith.constant 0 : i32
    return %c0_i32, %c0_i32_0 : i32, i32
  }
  func.func @transform_3(%arg0: i32) -> (i32, i32) {
    %c0_i32 = arith.constant 0 : i32
    %c0_i32_0 = arith.constant 0 : i32
    %c0_i32_1 = arith.constant 0 : i32
    return %c0_i32, %c0_i32_0 : i32, i32
  }
  func.func @transform_4(%arg0: i32) -> (i32, i32) {
    %c0_i32 = arith.constant 0 : i32
    %c0_i32_0 = arith.constant 0 : i32
    %c0_i32_1 = arith.constant 0 : i32
    return %c0_i32, %c0_i32_0 : i32, i32
  }
  func.func @transform_5(%arg0: i32) -> (i32, i32) {
    %c0_i32 = arith.constant 0 : i32
    %c0_i32_0 = arith.constant 0 : i32
    %c0_i32_1 = arith.constant 0 : i32
    return %c0_i32, %c0_i32_0 : i32, i32
  }
  func.func @transform_6(%arg0: i32) -> (i32, i32) {
    %c0_i32 = arith.constant 0 : i32
    %c0_i32_0 = arith.constant 0 : i32
    %c0_i32_1 = arith.constant 0 : i32
    return %c0_i32, %c0_i32_0 : i32, i32
  }
  func.func @transform_7(%arg0: i32) -> (i32, i32) {
    %c0_i32 = arith.constant 0 : i32
    %c0_i32_0 = arith.constant 0 : i32
    %c0_i32_1 = arith.constant 0 : i32
    return %c0_i32, %c0_i32_0 : i32, i32
  }
  func.func @transform_8(%arg0: i32) -> (i32, i32) {
    %c0_i32 = arith.constant 0 : i32
    %c0_i32_0 = arith.constant 0 : i32
    %c0_i32_1 = arith.constant 0 : i32
    return %c0_i32, %c0_i32_0 : i32, i32
  }
  func.func @transform_9(%arg0: i32) -> (i32, i32) {
    %c0_i32 = arith.constant 0 : i32
    %c0_i32_0 = arith.constant 0 : i32
    %c0_i32_1 = arith.constant 0 : i32
    return %c0_i32, %c0_i32_0 : i32, i32
  }
  func.func @transform_10(%arg0: i32) -> (i32, i32) {
    %c0_i32 = arith.constant 0 : i32
    %c0_i32_0 = arith.constant 0 : i32
    %c0_i32_1 = arith.constant 0 : i32
    return %c0_i32, %c0_i32_0 : i32, i32
  }
  func.func @transform_11(%arg0: i32) -> (i32, i32) {
    %c0_i32 = arith.constant 0 : i32
    %c0_i32_0 = arith.constant 0 : i32
    return %c0_i32, %arg0 : i32, i32
  }
}

</mosaic_0001>

<bundles_post_ra>
// kernel: net_forward.1
= control target key start
LH: loop header
LB: loop body
LE: loop exit
PB: predicated region body
PF: predicated region fallthrough
CT: control target
= control target key end

     0   :  { %v1887_v1 = vmov 0   ;;  %vm113_vm0 = vcmask 523264   ;;  %s1889_s22 = smov 118   ;;  %s1890_s23 = smov 120   ;;  %vm352_vm1 = vcmask 719872   ;;  %vm365_vm2 = vcmask 1043456   ;;  %s2422_s0 = inlined_call_operand.vmem [shape: bf16[64,128], index: 0, kind: input, shape index: {}]   ;;  %s2423_s1 = inlined_call_operand.vmem [shape: bf16[96,64], index: 1, kind: input, shape index: {}]   ;;  %s2424_s2 = inlined_call_operand.vmem [shape: f32[24,1], index: 2, kind: input, shape index: {}]   ;;  %s2425_s4 = inlined_call_operand.vmem [shape: f32[16,1], index: 4, kind: input, shape index: {}]   ;;  %s2426_s3 = inlined_call_operand.vmem [shape: bf16[64,216], index: 3, kind: input, shape index: {}]   ;;  %s2427_s5 = inlined_call_operand.vmem [shape: bf16[120,400], index: 5, kind: input, shape index: {}]   ;;  %s2428_s6 = inlined_call_operand.vmem [shape: f32[120,1], index: 6, kind: input, shape index: {}]   ;;  %s2429_s8 = inlined_call_operand.vmem [shape: f32[84,1], index: 8, kind: input, shape index: {}]   ;;  %s2430_s10 = inlined_call_operand.vmem [shape: f32[10,1], index: 10, kind: input, shape index: {}]   ;;  %s2431_s7 = inlined_call_operand.vmem [shape: bf16[84,120], index: 7, kind: input, shape index: {}]   ;;  %s2432_s9 = inlined_call_operand.vmem [shape: bf16[10,84], index: 9, kind: input, shape index: {}]   ;;  %s2433_s11 = inlined_call_operand.vmem [shape: f32[10,128], index: 11, kind: output, shape index: {}]  }
   0x1   :  { %v1812_v0 = vld [vmem:[%s2422_s0 + $0x18] sm:$0xff]   ;;  %1650 = vset.pattern.permute.xlu0 %v1887_v1  ;;  %1651 = vset.pattern.permute.xlu1 %v1887_v1  ;;  %v1813_v2 = vld [vmem:[%s2422_s0 + $0x10] sm:$0xff]   ;;  %v1814_v3 = vld [vmem:[%s2422_s0 + $0x8] sm:$0xff]   ;;  %s1891_s24 = smov 126   ;;  %s1892_s25 = smov 127   ;;  %vm843_vm3 = vcmask 130048  }
   0x2   :  { %369 = vmatprep.subr.bf16.mxu1 %v1887_v1  ;;  %1558 = vmatprep.subr.bf16.mxu0 %v1812_v0  ;;  %v1816_v4 = vld [vmem:[%s2423_s1] sm:$0xff]   ;;  %v223_v7 = vld [vmem:[%s2424_s2 + $0x8] sm:$0xff]  ;;  %v224_v8 = vld [vmem:[%s2424_s2 + $0x10] sm:$0xff]  ;;  %s1893_s26 = smov 110   ;;  %s1894_s27 = smov 111   ;;  %vm1188_vm4 = vcmask 982016  }
   0x3   :  { %1559 = vmatpush3.bf16.msra.mxu0 %v1812_v0  ;;  %1566 = vmatprep.mubr.msk.bf16.mxu0 %vm113_vm0, %v1816_v4  ;;  %v1815_v5 = vld [vmem:[%s2422_s0] sm:$0xff]   ;;  %v1817_v9 = vld [vmem:[%s2423_s1 + $0x8] sm:$0xff]   ;;  %v1818_v10 = vld [vmem:[%s2423_s1 + $0x10] sm:$0xff]   ;;  %s1895_s28 = smov 112   ;;  %s1897_s15 = smov 108   ;;  %vm1913_vm5 = vmmov 0  }
   0x4   :  { %1560 = vmatprep.subr.bf16.mxu0 %v1813_v2  ;;  %v222_v6 = vld [vmem:[%s2424_s2] sm:$0xff]  ;;  %232 = vperm.xlu1 %1651, %v223_v7   ;;  %v1819_v11 = vld [vmem:[%s2423_s1 + $0x18] sm:$0xff]   ;;  %v1821_v13 = vld [vmem:[%s2423_s1 + $0x28] sm:$0xff]   ;;  %s1899_s0 = smov 94   ;;  %s1900_s16 = smov 109   ;;  %vm1330_vm6 = vcmask 1041408  }
   0x5   :  { %227 = vperm.xlu0 %1650, %v222_v6   ;;  %v1820_v12 = vld [vmem:[%s2423_s1 + $0x20] sm:$0xff]   ;;  %s1888_s1 = smov 119   ;;  %v441_v48 = vld [vmem:[%s2425_s4 + $0x8] sm:$0xff]  ;;  %s1901_s17 = smov 95   ;;  %vm1326_vm7 = vcmask 687104  }
   0x6   :  { %v440_v47 = vld [vmem:[%s2425_s4] sm:$0xff]  ;;  %s1898_s4 = smov 93   ;;  %s1903_s18 = smov 124  }
   0x7   :  { %1561 = vmatpush3.bf16.msra.mxu0 %v1813_v2  ;;  %v1824_v49 = vld [vmem:[%s2426_s3 + $0x4] ss:$8 sps:$4 sm:$0xff]   ;;  %s1904_s19 = smov 125   ;;  %s1905_s2 = smov 100  }
   0x8   :  { %1562 = vmatprep.subr.bf16.mxu0 %v1814_v3  ;;  %1405 = vmatprep.mubr.msk.bf16.mxu1 %vm352_vm1, %v1824_v49  ;;  %s1907_s20 = smov 116   ;;  %s1910_s13 = smov 92  }
   0x9   :  { %237 = vperm.xlu0 %1650, %v224_v8   ;;  %s1911_s14 = smov 103  }
   0xb   :  { %1563 = vmatpush3.bf16.msra.mxu0 %v1814_v3 }
   0xc   :  { %1564 = vmatprep.subr.bf16.mxu0 %v1815_v5 }
   0xf   :  { %1565 = vmatpush3.bf16.msra.mxu0 %v1815_v5 }
  0x12   :  { %1567 = vmatmul.mubr.msk.bf16.vlgmr.msra.gmra.mxu0 %vm113_vm0, %v1817_v9 }
  0x13   :  { %1570 = vmatprep.mubr.msk.bf16.mxu0 %vm113_vm0, %v1818_v10 }
  0x1a   :  { %1571 = vmatmul.mubr.msk.bf16.gmra.mxu0 %vm113_vm0, %v1819_v11 }
  0x1b   :  { %1574 = vmatprep.mubr.msk.bf16.mxu0 %vm113_vm0, %v1820_v12 }
  0x22   :  { %1575 = vmatmul.mubr.msk.bf16.gmra.mxu0 %vm113_vm0, %v1821_v13 }
  0x7f   :  { %v233_v31 = vpop.permute.xlu1 %232 }
  0x80   :  { %v228_v24 = vpop.permute.xlu0 %227 }
  0x84   :  { %v238_v36 = vpop.permute.xlu0 %237 }
  0xd2   :  { %v1568_v14 = vpop.f32.mrf.mxu0 }
  0xd4   :  { %v166_v15 = vpop.f32.mrf.mxu0 }
  0xd6   :  { %v1569_v16 = vpop.f32.mrf.mxu0 }
  0xd7   :  { %v213_v33 = vmax.f32 %v166_v15, %v1569_v16 }
  0xd8   :  { %v169_v17 = vpop.f32.mrf.mxu0 }
  0xda   :  { %v1572_v18 = vpop.f32.mrf.mxu0 }
  0xdc   :  { %v182_v19 = vpop.f32.mrf.mxu0 }
  0xdd   :  { %v214_v26 = vmax.f32 %v169_v17, %v182_v19 }
  0xde   :  { %v1573_v20 = vpop.f32.mrf.mxu0 }
  0xe0   :  { %v185_v21 = vpop.f32.mrf.mxu0 }
  0xe1   :  { %v215_v28 = vmax.f32 %v1568_v14, %v185_v21 }
  0xe2   :  { %v1576_v22 = vpop.f32.mrf.mxu0 }
  0xe3   :  { %v217_v23 = vmax.f32 %v1573_v20, %v1576_v22 }
  0xe4   :  { %v198_v25 = vpop.f32.mrf.mxu0 }
  0xe5   :  { %v220_v29 = vmax.f32 %v214_v26, %v217_v23 }
  0xe6   :  { %v1577_v27 = vpop.f32.mrf.mxu0 }
  0xe7   :  { %v218_v30 = vmax.f32 %v198_v25, %v1577_v27  ;;  %v241_v37 = vadd.f32 %v233_v31, %v220_v29 }
  0xe8   :  { %v201_v32 = vpop.f32.mrf.mxu0 }
  0xe9   :  { %v221_v34 = vmax.f32 %v215_v28, %v218_v30  ;;  %v216_v35 = vmax.f32 %v1572_v18, %v201_v32  ;;  %v2024_v42 = vmax.f32 %v241_v37, 0.0  ;;  %v1830_v37 = vld [vmem:[%s2426_s3 + $0x20] ss:$8 sps:$4 sm:$0xff]  }
  0xeb   :  { %v242_v38 = vadd.f32 %v238_v36, %v221_v34  ;;  %v219_v39 = vmax.f32 %v213_v33, %v216_v35  ;;  %v1822_v33 = vld [vmem:[%s2426_s3] ss:$8 sps:$4 sm:$0xff]   ;;  %v1825_v34 = vld [vmem:[%s2426_s3 + $0x14] ss:$8 sps:$4 sm:$0xff]   ;;  %v1827_v35 = vld [vmem:[%s2426_s3 + $0x10] ss:$8 sps:$4 sm:$0xff]  }
  0xec   :  { %v1828_v36 = vld [vmem:[%s2426_s3 + $0x24] ss:$8 sps:$4 sm:$0xff]  }
  0xed   :  { %v2022_v40 = vmax.f32 %v242_v38, 0.0  ;;  %v240_v41 = vadd.f32 %v228_v24, %v219_v39  ;;  %v1831_v38 = vld [vmem:[%s2426_s3 + $0x34] ss:$8 sps:$4 sm:$0xff]   ;;  %v1833_v39 = vld [vmem:[%s2426_s3 + $0x30] ss:$8 sps:$4 sm:$0xff]   ;;  %s1896_s3 = smov 104  }
  0xef   :  { %v2026_v43 = vmax.f32 %v240_v41, 0.0  ;;  %268 = vrot.lane.b32.xlu1 %v2022_v40, %s1888_s1  ;;  %v1657_v46 = vpack.i.bf16 %v2022_v40, %v2024_v42 }
  0xf1   :  { %270 = vrot.lane.b32.xlu0 %v2026_v43, %s1889_s22  ;;  %v1652_v44 = vpack.i.bf16 %v2024_v42, %v2026_v43  ;;  %v294_v45 = vpack.c.bf16 %v2024_v42, %v2026_v43 }
  0xf3   :  { %1653 = vrot.lane.b32.xlu1 %v1652_v44, %s1888_s1 }
  0xf5   :  { %1658 = vrot.lane.b32.xlu0 %v1657_v46, %s1890_s23 }
  0xf7   :  { %256 = vrot.lane.b32.xlu1 %v2022_v40, %s1891_s24 }
  0xf9   :  { %258 = vrot.lane.b32.xlu0 %v2026_v43, %s1890_s23 }
  0xfb   :  { %1663 = vrot.lane.b32.xlu1 %v1652_v44, %s1891_s24 }
  0xfd   :  { %1668 = vrot.lane.b32.xlu0 %v1657_v46, %s1892_s25 }
  0xff   :  { %246 = vrot.lane.b32.xlu1 %v2026_v43, %s1892_s25 }
 0x101   :  { %292 = vrot.lane.b32.xlu0 %v2022_v40, %s1893_s26 }
 0x103   :  { %1673 = vrot.lane.b32.xlu1 %v1652_v44, %s1893_s26 }
 0x105   :  { %1678 = vrot.lane.b32.xlu0 %v1657_v46, %s1894_s27 }
 0x107   :  { %280 = vrot.lane.b32.xlu1 %v2022_v40, %s1895_s28 }
 0x109   :  { %282 = vrot.lane.b32.xlu0 %v2026_v43, %s1894_s27 }
 0x10b   :  { %1683 = vrot.lane.b32.xlu1 %v1652_v44, %s1895_s28 }
 0x10d   :  { %1688 = vrot.lane.b32.xlu0 %v1657_v46, %s1889_s22 }
 0x10f   :  { %444 = vperm.xlu1 %1651, %v440_v47  }
 0x111   :  { %449 = vperm.xlu0 %1650, %v441_v48  }
 0x161   :  { %v269_v50 = vpop.permute.xlu1 %268 }
 0x163   :  { %v271_v51 = vpop.permute.xlu0 %270 }
 0x164   :  { %v301_v52 = vpack.c.bf16 %v271_v51, %v269_v50 }
 0x165   :  { %v1654_v53 = vpop.permute.xlu1 %1653 }
 0x166   :  { %v1656_v54 = vunpack.i.h.bf16 %v1654_v53  ;;  %v1655_v55 = vunpack.i.l.bf16 %v1654_v53  ;;  %370 = vmatpush1.bf16.msra.mxu1 %v301_v52 }
 0x167   :  { %v1659_v56 = vpop.permute.xlu0 %1658  ;;  %371 = vmatprep.subr.bf16.mxu1 %v1887_v1 }
 0x168   :  { %v300_v57 = vpack.c.bf16 %v1656_v54, %v1655_v55  ;;  %v1661_v58 = vunpack.i.h.bf16 %v1659_v56  ;;  %v1660_v59 = vunpack.i.l.bf16 %v1659_v56 }
 0x169   :  { %v257_v60 = vpop.permute.xlu1 %256 }
 0x16a   :  { %372 = vmatpush1.bf16.msra.mxu1 %v300_v57  ;;  %v299_v62 = vpack.c.bf16 %v1661_v58, %v1660_v59 }
 0x16b   :  { %v259_v61 = vpop.permute.xlu0 %258  ;;  %373 = vmatprep.subr.bf16.mxu1 %v1887_v1 }
 0x16c   :  { %v298_v0 = vpack.c.bf16 %v259_v61, %v257_v60 }
 0x16d   :  { %v1664_v63 = vpop.permute.xlu1 %1663 }
 0x16e   :  { %374 = vmatpush1.bf16.msra.mxu1 %v299_v62  ;;  %v1666_v2 = vunpack.i.h.bf16 %v1664_v63  ;;  %v1665_v3 = vunpack.i.l.bf16 %v1664_v63 }
 0x16f   :  { %375 = vmatprep.subr.bf16.mxu1 %v1887_v1  ;;  %v1669_v4 = vpop.permute.xlu0 %1668 }
 0x170   :  { %v297_v5 = vpack.c.bf16 %v1666_v2, %v1665_v3  ;;  %v1671_v6 = vunpack.i.h.bf16 %v1669_v4  ;;  %v1670_v7 = vunpack.i.l.bf16 %v1669_v4 }
 0x171   :  { %v247_v9 = vpop.permute.xlu1 %246 }
 0x172   :  { %376 = vmatpush1.bf16.msra.mxu1 %v298_v0  ;;  %v296_v8 = vpack.c.bf16 %v1671_v6, %v1670_v7  ;;  %v295_v10 = vpack.c.bf16 %v247_v9, %v2022_v40  ;;  %v1836_v7 = vld [vmem:[%s2427_s5 + $0x4] ss:$16 sps:$4 sm:$0xff]  }
 0x173   :  { %377 = vmatprep.subr.bf16.mxu1 %v1887_v1  ;;  %v293_v11 = vpop.permute.xlu0 %292  ;;  %900 = vmatprep.mubr.bf16.mxu0 %v1836_v7  ;;  %v619_v9 = vld [vmem:[%s2428_s6 + $0x60] sm:$0xff] }
 0x174   :  { %v307_v12 = vpack.c.bf16 %v293_v11, %v293_v11  ;;  %v617_v11 = vld [vmem:[%s2428_s6 + $0x50] sm:$0xff] }
 0x175   :  { %v1674_v13 = vpop.permute.xlu1 %1673 }
 0x176   :  { %378 = vmatpush1.bf16.msra.mxu1 %v297_v5  ;;  %v1676_v14 = vunpack.i.h.bf16 %v1674_v13  ;;  %v1675_v15 = vunpack.i.l.bf16 %v1674_v13  ;;  %v367_v17 = vsel %vm365_vm2, %v307_v12, 0  ;;  %v620_v12 = vld [vmem:[%s2428_s6 + $0x68] sm:$0xff]  ;;  %v615_v13 = vld [vmem:[%s2428_s6 + $0x40] sm:$0xff] }
 0x177   :  { %379 = vmatprep.subr.bf16.mxu1 %v1887_v1  ;;  %v1679_v16 = vpop.permute.xlu0 %1678 }
 0x178   :  { %v306_v19 = vpack.c.bf16 %v1676_v14, %v1675_v15  ;;  %v1681_v20 = vunpack.i.h.bf16 %v1679_v16  ;;  %v1680_v21 = vunpack.i.l.bf16 %v1679_v16  ;;  %v618_v14 = vld [vmem:[%s2428_s6 + $0x58] sm:$0xff]  ;;  %v613_v15 = vld [vmem:[%s2428_s6 + $0x30] sm:$0xff]  ;;  %v616_v16 = vld [vmem:[%s2428_s6 + $0x48] sm:$0xff] }
 0x179   :  { %v281_v18 = vpop.permute.xlu1 %280 }
 0x17a   :  { %380 = vmatpush1.bf16.msra.mxu1 %v296_v8  ;;  %v305_v23 = vpack.c.bf16 %v1681_v20, %v1680_v21  ;;  %v1839_v8 = vld [vmem:[%s2427_s5 + $0xc] ss:$16 sps:$4 sm:$0xff]   ;;  %v607_v21 = vld [vmem:[%s2428_s6] sm:$0xff] }
 0x17b   :  { %381 = vmatprep.subr.bf16.mxu1 %v1887_v1  ;;  %v283_v22 = vpop.permute.xlu0 %282  ;;  %v612_v20 = vld [vmem:[%s2428_s6 + $0x28] sm:$0xff] }
 0x17c   :  { %v304_v25 = vpack.c.bf16 %v283_v22, %v281_v18  ;;  %v614_v18 = vld [vmem:[%s2428_s6 + $0x38] sm:$0xff] }
 0x17d   :  { %v1684_v24 = vpop.permute.xlu1 %1683  ;;  %v610_v22 = vld [vmem:[%s2428_s6 + $0x18] sm:$0xff] }
 0x17e   :  { %382 = vmatpush1.bf16.msra.mxu1 %v295_v10  ;;  %v1686_v26 = vunpack.i.h.bf16 %v1684_v24  ;;  %v1685_v27 = vunpack.i.l.bf16 %v1684_v24  ;;  %v621_v10 = vld [vmem:[%s2428_s6 + $0x70] sm:$0xff]  ;;  %v608_v24 = vld [vmem:[%s2428_s6 + $0x8] sm:$0xff] }
 0x17f   :  { %383 = vmatprep.subr.bf16.mxu1 %v1887_v1  ;;  %v1689_v28 = vpop.permute.xlu0 %1688 }
 0x180   :  { %v303_v29 = vpack.c.bf16 %v1686_v26, %v1685_v27  ;;  %v1691_v30 = vunpack.i.h.bf16 %v1689_v28  ;;  %v1690_v31 = vunpack.i.l.bf16 %v1689_v28  ;;  %v1102_v26 = vld [vmem:[%s2429_s8 + $0x40] sm:$0xff]  ;;  %v1101_v27 = vld [vmem:[%s2429_s8 + $0x38] sm:$0xff]  ;;  %v1100_v28 = vld [vmem:[%s2429_s8 + $0x30] sm:$0xff] }
 0x182   :  { %384 = vmatpush1.bf16.msra.mxu1 %v294_v45  ;;  %v302_v32 = vpack.c.bf16 %v1691_v30, %v1690_v31  ;;  %v1098_v30 = vld [vmem:[%s2429_s8 + $0x20] sm:$0xff]  ;;  %v1097_v31 = vld [vmem:[%s2429_s8 + $0x18] sm:$0xff] }
 0x183   :  { %389 = vmatprep.subr.bf16.mxu1 %v1887_v1 }
 0x186   :  { %390 = vmatpush2.bf16.msra.mxu1 %v367_v17  ;;  %v611_v17 = vld [vmem:[%s2428_s6 + $0x20] sm:$0xff] }
 0x187   :  { %391 = vmatprep.subr.bf16.mxu1 %v1887_v1 }
 0x18a   :  { %392 = vmatpush2.bf16.msra.mxu1 %v306_v19  ;;  %v445_v60 = vpop.permute.xlu1 %444  ;;  %v609_v19 = vld [vmem:[%s2428_s6 + $0x10] sm:$0xff] }
 0x18b   :  { %393 = vmatprep.subr.bf16.mxu1 %v1887_v1 }
 0x18c   :  { %v450_v0 = vpop.permute.xlu0 %449 }
 0x18e   :  { %394 = vmatpush2.bf16.msra.mxu1 %v305_v23  ;;  %v1104_v23 = vld [vmem:[%s2429_s8 + $0x50] sm:$0xf] }
 0x18f   :  { %395 = vmatprep.subr.bf16.mxu1 %v1887_v1 }
 0x192   :  { %396 = vmatpush2.bf16.msra.mxu1 %v304_v25  ;;  %v1103_v25 = vld [vmem:[%s2429_s8 + $0x48] sm:$0xff] }
 0x193   :  { %397 = vmatprep.subr.bf16.mxu1 %v1887_v1 }
 0x196   :  { %398 = vmatpush2.bf16.msra.mxu1 %v303_v29  ;;  %v1099_v29 = vld [vmem:[%s2429_s8 + $0x28] sm:$0xff] }
 0x197   :  { %399 = vmatprep.subr.bf16.mxu1 %v1887_v1 }
 0x19a   :  { %400 = vmatpush2.bf16.msra.mxu1 %v302_v32  ;;  %v1096_v32 = vld [vmem:[%s2429_s8 + $0x10] sm:$0xff] }
 0x19b   :  { %964 = vmatprep.subr.bf16.mxu1 %v1887_v1 }
 0x19d   :  { %402 = vmatmul.mubr.bf16.vlgmr.msra.gmra.mxu1 %v1822_v33  ;;  %v1095_v33 = vld [vmem:[%s2429_s8 + $0x8] sm:$0xff] }
 0x19e   :  { %1406 = vmatprep.mubr.msk.bf16.mxu1 %vm352_vm1, %v1825_v34  ;;  %v1094_v34 = vld [vmem:[%s2429_s8] sm:$0xff] }
 0x1a5   :  { %410 = vmatmul.mubr.bf16.gmra.mxu1 %v1827_v35  ;;  %v1310_v35 = vld [vmem:[%s2430_s10 + $0x8] sm:$0x3] }
 0x1a6   :  { %1407 = vmatprep.mubr.msk.bf16.mxu1 %vm352_vm1, %v1828_v36  ;;  %v1309_v36 = vld [vmem:[%s2430_s10] sm:$0xff] }
 0x1ad   :  { %418 = vmatmul.mubr.bf16.gmra.mxu1 %v1830_v37 }
 0x1ae   :  { %1408 = vmatprep.mubr.msk.bf16.mxu1 %vm352_vm1, %v1831_v38 }
 0x1b5   :  { %426 = vmatmul.mubr.bf16.gmra.mxu1 %v1833_v39 }
 0x1b6   :  { %1441 = vmatprep.mubr.msk.bf16.mxu1 %vm843_vm3, %v1839_v8 }
 0x25d   :  { %v403_v40 = vpop.f32.mrf.mxu1 }
 0x25f   :  { %v405_v41 = vpop.f32.mrf.mxu1 }
 0x261   :  { %v406_v42 = vpop.f32.mrf.mxu1 }
 0x263   :  { %v408_v43 = vpop.f32.mrf.mxu1 }
 0x265   :  { %v411_v44 = vpop.f32.mrf.mxu1 }
 0x266   :  { %v434_v53 = vmax.f32 %v403_v40, %v411_v44 }
 0x267   :  { %v413_v45 = vpop.f32.mrf.mxu1 }
 0x269   :  { %v414_v46 = vpop.f32.mrf.mxu1 }
 0x26a   :  { %v435_v58 = vmax.f32 %v406_v42, %v414_v46 }
 0x26b   :  { %v416_v47 = vpop.f32.mrf.mxu1 }
 0x26d   :  { %v419_v48 = vpop.f32.mrf.mxu1 }
 0x26f   :  { %v421_v49 = vpop.f32.mrf.mxu1 }
 0x271   :  { %v422_v50 = vpop.f32.mrf.mxu1 }
 0x273   :  { %v424_v51 = vpop.f32.mrf.mxu1 }
 0x275   :  { %v427_v52 = vpop.f32.mrf.mxu1 }
 0x276   :  { %v436_v54 = vmax.f32 %v419_v48, %v427_v52 }
 0x277   :  { %v429_v55 = vpop.f32.mrf.mxu1 }
 0x278   :  { %v438_v56 = vmax.f32 %v434_v53, %v436_v54 }
 0x279   :  { %v430_v57 = vpop.f32.mrf.mxu1 }
 0x27a   :  { %v437_v59 = vmax.f32 %v422_v50, %v430_v57  ;;  %v452_v62 = vadd.f32 %v445_v60, %v438_v56 }
 0x27b   :  { %v432_v61 = vpop.f32.mrf.mxu1 }
 0x27c   :  { %v439_v63 = vmax.f32 %v435_v58, %v437_v59  ;;  %v454_v3 = vmax.f32 %v452_v62, 0.0 }
 0x27e   :  { %v453_v2 = vadd.f32 %v450_v0, %v439_v63 }
 0x280   :  { %v455_v4 = vmax.f32 %v453_v2, 0.0 }
 0x282   :  { %v1697_v5 = vpack.i.bf16 %v455_v4, %v454_v3  ;;  %v2112_v6 = vpack.c.bf16 %v455_v4, %v454_v3 }
 0x284   :  { %1698 = vrot.lane.b32.xlu0 %v1697_v5, %s1889_s22  ;;  %1693 = vrot.lane.b32.xlu1 %v1697_v5, %s1896_s3  ;;  %s1902_s22 = smov 96  }
 0x288   :  { %1708 = vrot.lane.b32.xlu0 %v1697_v5, %s1897_s15  ;;  %1703 = vrot.lane.b32.xlu1 %v1697_v5, %s1898_s4 }
 0x28c   :  { %1718 = vrot.lane.b32.xlu0 %v1697_v5, %s1899_s0  ;;  %1713 = vrot.lane.b32.xlu1 %v1697_v5, %s1888_s1  ;;  %s1906_s1 = smov 101  }
 0x290   :  { %1728 = vrot.lane.b32.xlu0 %v1697_v5, %s1890_s23  ;;  %1723 = vrot.lane.b32.xlu1 %v1697_v5, %s1900_s16 }
 0x294   :  { %1738 = vrot.lane.b32.xlu0 %v1697_v5, %s1893_s26  ;;  %1733 = vrot.lane.b32.xlu1 %v1697_v5, %s1901_s17 }
 0x298   :  { %1748 = vrot.lane.b32.xlu0 %v1697_v5, %s1902_s22  ;;  %1743 = vrot.lane.b32.xlu1 %v1697_v5, %s1903_s18 }
 0x29c   :  { %1758 = vrot.lane.b32.xlu0 %v1697_v5, %s1904_s19  ;;  %1753 = vrot.lane.b32.xlu1 %v1697_v5, %s1894_s27  ;;  %s1908_s27 = smov 117  }
 0x2a0   :  { %1768 = vrot.lane.b32.xlu0 %v1697_v5, %s1895_s28  ;;  %1763 = vrot.lane.b32.xlu1 %v1697_v5, %s1905_s2  ;;  %s1909_s28 = smov 102  }
 0x2a4   :  { %1778 = vrot.lane.b32.xlu0 %v1697_v5, %s1906_s1  ;;  %1773 = vrot.lane.b32.xlu1 %v1697_v5, %s1891_s24 }
 0x2a8   :  { %1788 = vrot.lane.b32.xlu0 %v1697_v5, %s1892_s25  ;;  %1783 = vrot.lane.b32.xlu1 %v1697_v5, %s1907_s20 }
 0x2ac   :  { %1798 = vrot.lane.b32.xlu0 %v1697_v5, %s1908_s27  ;;  %1793 = vrot.lane.b32.xlu1 %v1697_v5, %s1909_s28 }
 0x2b0   :  { %1808 = vrot.lane.b32.xlu0 %v1697_v5, %s1910_s13  ;;  %1803 = vrot.lane.b32.xlu1 %v1697_v5, %s1911_s14 }
 0x2b4   :  { %684 = vperm.xlu0 %1650, %v619_v9   ;;  %694 = vperm.xlu1 %1651, %v621_v10  }
 0x2b8   :  { %674 = vperm.xlu0 %1650, %v617_v11   ;;  %689 = vperm.xlu1 %1651, %v620_v12  }
 0x2bc   :  { %664 = vperm.xlu0 %1650, %v615_v13   ;;  %679 = vperm.xlu1 %1651, %v618_v14  }
 0x2c0   :  { %654 = vperm.xlu0 %1650, %v613_v15   ;;  %669 = vperm.xlu1 %1651, %v616_v16  }
 0x2c4   :  { %644 = vperm.xlu0 %1650, %v611_v17   ;;  %659 = vperm.xlu1 %1651, %v614_v18  }
 0x2c8   :  { %634 = vperm.xlu0 %1650, %v609_v19   ;;  %649 = vperm.xlu1 %1651, %v612_v20  }
 0x2cc   :  { %624 = vperm.xlu0 %1650, %v607_v21   ;;  %639 = vperm.xlu1 %1651, %v610_v22  }
 0x2d0   :  { %1157 = vperm.xlu0 %1650, %v1104_v23   ;;  %629 = vperm.xlu1 %1651, %v608_v24  }
 0x2d4   :  { %1152 = vperm.xlu0 %1650, %v1103_v25   ;;  %1147 = vperm.xlu1 %1651, %v1102_v26  }
 0x2d8   :  { %1142 = vperm.xlu0 %1650, %v1101_v27   ;;  %1137 = vperm.xlu1 %1651, %v1100_v28  }
 0x2dc   :  { %1132 = vperm.xlu0 %1650, %v1099_v29   ;;  %1127 = vperm.xlu1 %1651, %v1098_v30  }
 0x2e0   :  { %1122 = vperm.xlu0 %1650, %v1097_v31   ;;  %1117 = vperm.xlu1 %1651, %v1096_v32  }
 0x2e4   :  { %1112 = vperm.xlu0 %1650, %v1095_v33   ;;  %1107 = vperm.xlu1 %1651, %v1094_v34  }
 0x2e8   :  { %1318 = vperm.xlu0 %1650, %v1310_v35   ;;  %1313 = vperm.xlu1 %1651, %v1309_v36  }
 0x2f6   :  { %v1699_v37 = vpop.permute.xlu0 %1698  ;;  %v1694_v38 = vpop.permute.xlu1 %1693 }
 0x2f7   :  { %v1701_v39 = vunpack.i.h.bf16 %v1699_v37  ;;  %v1700_v40 = vunpack.i.l.bf16 %v1699_v37  ;;  %v1696_v41 = vunpack.i.h.bf16 %v1694_v38  ;;  %v1695_v42 = vunpack.i.l.bf16 %v1694_v38 }
 0x2f9   :  { %v559_v43 = vpack.c.bf16 %v1701_v39, %v1700_v40  ;;  %v567_v44 = vpack.c.bf16 %v1696_v41, %v1695_v42 }
 0x2fa   :  { %v1709_v45 = vpop.permute.xlu0 %1708  ;;  %v1704_v46 = vpop.permute.xlu1 %1703 }
 0x2fb   :  { %v1711_v47 = vunpack.i.h.bf16 %v1709_v45  ;;  %v1710_v48 = vunpack.i.l.bf16 %v1709_v45  ;;  %v1706_v49 = vunpack.i.h.bf16 %v1704_v46  ;;  %v1705_v50 = vunpack.i.l.bf16 %v1704_v46  ;;  %1473 = vmatprep.subr.bf16.mxu0 %v567_v44 }
 0x2fc   :  { %1474 = vmatpush3.bf16.msra.mxu0 %v559_v43 }
 0x2fd   :  { %v566_v51 = vpack.c.bf16 %v1711_v47, %v1710_v48  ;;  %v575_v52 = vpack.c.bf16 %v1706_v49, %v1705_v50 }
 0x2fe   :  { %v1719_v53 = vpop.permute.xlu0 %1718  ;;  %v1714_v54 = vpop.permute.xlu1 %1713 }
 0x2ff   :  { %v1721_v55 = vunpack.i.h.bf16 %v1719_v53  ;;  %v1720_v56 = vunpack.i.l.bf16 %v1719_v53  ;;  %v1716_v57 = vunpack.i.h.bf16 %v1714_v54  ;;  %v1715_v58 = vunpack.i.l.bf16 %v1714_v54  ;;  %1475 = vmatprep.subr.bf16.mxu0 %v566_v51  ;;  %965 = vmatpush1.bf16.msra.mxu1 %v575_v52 }
 0x300   :  { %966 = vmatprep.subr.bf16.mxu1 %v1887_v1 }
 0x301   :  { %v574_v59 = vpack.c.bf16 %v1721_v55, %v1720_v56  ;;  %v558_v60 = vpack.c.bf16 %v1716_v57, %v1715_v58 }
 0x302   :  { %v1729_v61 = vpop.permute.xlu0 %1728  ;;  %v1724_v62 = vpop.permute.xlu1 %1723 }
 0x303   :  { %v1731_v63 = vunpack.i.h.bf16 %v1729_v61  ;;  %v1730_v0 = vunpack.i.l.bf16 %v1729_v61  ;;  %v1726_v2 = vunpack.i.h.bf16 %v1724_v62  ;;  %v1725_v3 = vunpack.i.l.bf16 %v1724_v62  ;;  %1476 = vmatpush3.bf16.msra.mxu0 %v558_v60  ;;  %967 = vmatpush1.bf16.msra.mxu1 %v574_v59 }
 0x304   :  { %968 = vmatprep.subr.bf16.mxu1 %v1887_v1 }
 0x305   :  { %v557_v4 = vpack.c.bf16 %v1731_v63, %v1730_v0  ;;  %v565_v5 = vpack.c.bf16 %v1726_v2, %v1725_v3 }
 0x306   :  { %v1739_v7 = vpop.permute.xlu0 %1738  ;;  %v1734_v8 = vpop.permute.xlu1 %1733 }
 0x307   :  { %v1741_v9 = vunpack.i.h.bf16 %v1739_v7  ;;  %v1740_v10 = vunpack.i.l.bf16 %v1739_v7  ;;  %v1736_v11 = vunpack.i.h.bf16 %v1734_v8  ;;  %v1735_v12 = vunpack.i.l.bf16 %v1734_v8  ;;  %1477 = vmatprep.subr.bf16.mxu0 %v565_v5  ;;  %v1840_v5 = vld [vmem:[%s2427_s5 + $0x24] ss:$16 sps:$4 sm:$0xff]  }
 0x308   :  { %1478 = vmatpush3.bf16.msra.mxu0 %v557_v4  ;;  %v1834_v4 = vld [vmem:[%s2427_s5] ss:$16 sps:$4 sm:$0xff]  }
 0x309   :  { %v564_v13 = vpack.c.bf16 %v1741_v9, %v1740_v10  ;;  %v573_v14 = vpack.c.bf16 %v1736_v11, %v1735_v12  ;;  %v1837_v11 = vld [vmem:[%s2427_s5 + $0x8] ss:$16 sps:$4 sm:$0xff]   ;;  %v1843_v12 = vld [vmem:[%s2427_s5 + $0x2c] ss:$16 sps:$4 sm:$0xff]  }
 0x30a   :  { %v1749_v15 = vpop.permute.xlu0 %1748  ;;  %v1744_v16 = vpop.permute.xlu1 %1743 }
 0x30b   :  { %v1751_v17 = vunpack.i.h.bf16 %v1749_v15  ;;  %v1750_v18 = vunpack.i.l.bf16 %v1749_v15  ;;  %v1746_v19 = vunpack.i.h.bf16 %v1744_v16  ;;  %v1745_v20 = vunpack.i.l.bf16 %v1744_v16  ;;  %1479 = vmatprep.subr.bf16.mxu0 %v564_v13  ;;  %969 = vmatpush1.bf16.msra.mxu1 %v573_v14  ;;  %v1845_v13 = vld [vmem:[%s2427_s5 + $0x44] ss:$16 sps:$4 sm:$0xff]   ;;  %v1848_v14 = vld [vmem:[%s2427_s5 + $0x40] ss:$16 sps:$4 sm:$0xff]   ;;  %v1849_v15 = vld [vmem:[%s2427_s5 + $0x4c] ss:$16 sps:$4 sm:$0xff]  }
 0x30c   :  { %970 = vmatprep.subr.bf16.mxu1 %v1887_v1  ;;  %v1851_v16 = vld [vmem:[%s2427_s5 + $0x64] ss:$16 sps:$4 sm:$0xff]  }
 0x30d   :  { %v572_v21 = vpack.c.bf16 %v1751_v17, %v1750_v18  ;;  %v556_v22 = vpack.c.bf16 %v1746_v19, %v1745_v20  ;;  %v1853_v17 = vld [vmem:[%s2427_s5 + $0x48] ss:$16 sps:$4 sm:$0xff]   ;;  %v1854_v18 = vld [vmem:[%s2427_s5 + $0x60] ss:$16 sps:$4 sm:$0xff]   ;;  %v1855_v19 = vld [vmem:[%s2427_s5 + $0x6c] ss:$16 sps:$4 sm:$0xff]  }
 0x30e   :  { %v1759_v23 = vpop.permute.xlu0 %1758  ;;  %v1754_v24 = vpop.permute.xlu1 %1753  ;;  %v1857_v20 = vld [vmem:[%s2427_s5 + $0x84] ss:$16 sps:$4 sm:$0xff]  }
 0x30f   :  { %v1761_v25 = vunpack.i.h.bf16 %v1759_v23  ;;  %v1760_v26 = vunpack.i.l.bf16 %v1759_v23  ;;  %v1756_v27 = vunpack.i.h.bf16 %v1754_v24  ;;  %v1755_v28 = vunpack.i.l.bf16 %v1754_v24  ;;  %1480 = vmatpush3.bf16.msra.mxu0 %v556_v22  ;;  %971 = vmatpush1.bf16.msra.mxu1 %v572_v21  ;;  %v1859_v21 = vld [vmem:[%s2427_s5 + $0x68] ss:$16 sps:$4 sm:$0xff]   ;;  %v1860_v22 = vld [vmem:[%s2427_s5 + $0x80] ss:$16 sps:$4 sm:$0xff]   ;;  %v1861_v23 = vld [vmem:[%s2427_s5 + $0x8c] ss:$16 sps:$4 sm:$0xff]  }
 0x310   :  { %972 = vmatprep.subr.bf16.mxu1 %v1887_v1  ;;  %v1863_v24 = vld [vmem:[%s2427_s5 + $0xa4] ss:$16 sps:$4 sm:$0xff]  }
 0x311   :  { %v555_v29 = vpack.c.bf16 %v1761_v25, %v1760_v26  ;;  %v563_v30 = vpack.c.bf16 %v1756_v27, %v1755_v28  ;;  %v1865_v25 = vld [vmem:[%s2427_s5 + $0x88] ss:$16 sps:$4 sm:$0xff]   ;;  %v1866_v26 = vld [vmem:[%s2427_s5 + $0xa0] ss:$16 sps:$4 sm:$0xff]   ;;  %v1867_v27 = vld [vmem:[%s2427_s5 + $0xac] ss:$16 sps:$4 sm:$0xff]  }
 0x312   :  { %v1769_v31 = vpop.permute.xlu0 %1768  ;;  %v1764_v32 = vpop.permute.xlu1 %1763  ;;  %v1869_v28 = vld [vmem:[%s2427_s5 + $0xc4] ss:$16 sps:$4 sm:$0xff]  }
 0x313   :  { %v1771_v33 = vunpack.i.h.bf16 %v1769_v31  ;;  %v1770_v34 = vunpack.i.l.bf16 %v1769_v31  ;;  %v1766_v35 = vunpack.i.h.bf16 %v1764_v32  ;;  %v1765_v36 = vunpack.i.l.bf16 %v1764_v32  ;;  %1481 = vmatprep.subr.bf16.mxu0 %v563_v30  ;;  %v1871_v30 = vld [vmem:[%s2427_s5 + $0xa8] ss:$16 sps:$4 sm:$0xff]   ;;  %v1872_v31 = vld [vmem:[%s2427_s5 + $0xc0] ss:$16 sps:$4 sm:$0xff]   ;;  %v1873_v32 = vld [vmem:[%s2427_s5 + $0xcc] ss:$16 sps:$4 sm:$0xff]  }
 0x314   :  { %1482 = vmatpush3.bf16.msra.mxu0 %v555_v29  ;;  %v605_v29 = vld [vmem:[%s2427_s5 + $0xe0] sm:$0xff] }
 0x315   :  { %v562_v37 = vpack.c.bf16 %v1771_v33, %v1770_v34  ;;  %v571_v38 = vpack.c.bf16 %v1766_v35, %v1765_v36  ;;  %v1438_v33 = vcombine.high %v605_v29, %v605_v29  ;;  %v606_v34 = vld [vmem:[%s2427_s5 + $0xe8] sm:$0xff]  ;;  %v1437_v36 = vcombine.low %v605_v29, %v605_v29 }
 0x316   :  { %v1779_v39 = vpop.permute.xlu0 %1778  ;;  %v1774_v40 = vpop.permute.xlu1 %1773  ;;  %v1876_v35 = vld [vmem:[%s2427_s5 + $0xc8] ss:$16 sps:$4 sm:$0xff]  }
 0x317   :  { %v1781_v41 = vunpack.i.h.bf16 %v1779_v39  ;;  %v1780_v42 = vunpack.i.l.bf16 %v1779_v39  ;;  %v1776_v43 = vunpack.i.h.bf16 %v1774_v40  ;;  %v1775_v44 = vunpack.i.l.bf16 %v1774_v40  ;;  %1483 = vmatprep.subr.bf16.mxu0 %v562_v37  ;;  %973 = vmatpush1.bf16.msra.mxu1 %v571_v38 }
 0x318   :  { %974 = vmatprep.subr.bf16.mxu1 %v1887_v1  ;;  %v1440_v37 = vcombine.high %v606_v34, %v606_v34  ;;  %v1439_v38 = vcombine.low %v606_v34, %v606_v34 }
 0x319   :  { %v570_v45 = vpack.c.bf16 %v1781_v41, %v1780_v42  ;;  %v554_v46 = vpack.c.bf16 %v1776_v43, %v1775_v44  ;;  %v1880_v42 = vld [vmem:[%s2431_s7] sm:$0xff]  }
 0x31a   :  { %v1789_v47 = vpop.permute.xlu0 %1788  ;;  %v1784_v48 = vpop.permute.xlu1 %1783 }
 0x31b   :  { %v1791_v49 = vunpack.i.h.bf16 %v1789_v47  ;;  %v1790_v50 = vunpack.i.l.bf16 %v1789_v47  ;;  %v1786_v51 = vunpack.i.h.bf16 %v1784_v48  ;;  %v1785_v52 = vunpack.i.l.bf16 %v1784_v48  ;;  %1484 = vmatpush3.bf16.msra.mxu0 %v554_v46  ;;  %975 = vmatpush1.bf16.msra.mxu1 %v570_v45 }
 0x31c   :  { %976 = vmatprep.subr.bf16.mxu1 %v1887_v1 }
 0x31d   :  { %v553_v53 = vpack.c.bf16 %v1791_v49, %v1790_v50  ;;  %v561_v54 = vpack.c.bf16 %v1786_v51, %v1785_v52 }
 0x31e   :  { %v1799_v55 = vpop.permute.xlu0 %1798  ;;  %v1794_v56 = vpop.permute.xlu1 %1793 }
 0x31f   :  { %v1801_v57 = vunpack.i.h.bf16 %v1799_v55  ;;  %v1800_v58 = vunpack.i.l.bf16 %v1799_v55  ;;  %v1796_v59 = vunpack.i.h.bf16 %v1794_v56  ;;  %v1795_v60 = vunpack.i.l.bf16 %v1794_v56  ;;  %1485 = vmatprep.subr.bf16.mxu0 %v561_v54 }
 0x320   :  { %1486 = vmatpush3.bf16.msra.mxu0 %v553_v53 }
 0x321   :  { %v560_v61 = vpack.c.bf16 %v1801_v57, %v1800_v58  ;;  %v569_v62 = vpack.c.bf16 %v1796_v59, %v1795_v60 }
 0x322   :  { %v1809_v63 = vpop.permute.xlu0 %1808  ;;  %v1804_v0 = vpop.permute.xlu1 %1803 }
 0x323   :  { %v1806_v2 = vunpack.i.h.bf16 %v1804_v0  ;;  %v1805_v3 = vunpack.i.l.bf16 %v1804_v0  ;;  %1487 = vmatprep.subr.bf16.mxu0 %v560_v61  ;;  %977 = vmatpush1.bf16.msra.mxu1 %v569_v62  ;;  %v1811_v7 = vunpack.i.h.bf16 %v1809_v63  ;;  %v1810_v8 = vunpack.i.l.bf16 %v1809_v63 }
 0x324   :  { %1488 = vmatpush3.bf16.msra.mxu0 %v2112_v6  ;;  %978 = vmatprep.subr.bf16.mxu1 %v1887_v1  ;;  %v1842_v6 = vld [vmem:[%s2427_s5 + $0x20] ss:$16 sps:$4 sm:$0xff]  }
 0x325   :  { %v568_v9 = vpack.c.bf16 %v1806_v2, %v1805_v3  ;;  %v576_v10 = vpack.c.bf16 %v1811_v7, %v1810_v8 }
 0x327   :  { %901 = vmatmul.mubr.bf16.vlgmr.msra.gmra.mxu0 %v1834_v4  ;;  %979 = vmatpush1.bf16.msra.mxu1 %v568_v9 }
 0x328   :  { %994 = vmatprep.subr.bf16.mxu1 %v1887_v1  ;;  %908 = vmatprep.mubr.bf16.mxu0 %v1840_v5  ;;  %v1847_v1 = vld [vmem:[%s2427_s5 + $0x28] ss:$16 sps:$4 sm:$0xff]  }
 0x32b   :  { %995 = vmatpush2.bf16.msra.mxu1 %v576_v10 }
 0x32e   :  { %997 = vmatmul.mubr.bf16.vlgmr.msra.gmra.mxu1 %v1837_v11 }
 0x32f   :  { %909 = vmatmul.mubr.bf16.gmra.mxu0 %v1842_v6  ;;  %1442 = vmatprep.mubr.msk.bf16.mxu1 %vm843_vm3, %v1843_v12  ;;  %v2312_v39 = vpop.permute.xlu1 %694  ;;  %v2314_v40 = vpop.permute.xlu0 %684 }
 0x330   :  { %916 = vmatprep.mubr.bf16.mxu0 %v1845_v13 }
 0x333   :  { %v2316_v41 = vpop.permute.xlu1 %689  ;;  %v2321_v43 = vpop.permute.xlu0 %674 }
 0x336   :  { %1005 = vmatmul.mubr.bf16.gmra.mxu1 %v1847_v1 }
 0x337   :  { %917 = vmatmul.mubr.bf16.gmra.mxu0 %v1848_v14  ;;  %1443 = vmatprep.mubr.msk.bf16.mxu1 %vm843_vm3, %v1849_v15  ;;  %v2324_v44 = vpop.permute.xlu1 %679  ;;  %v2326_v45 = vpop.permute.xlu0 %664 }
 0x338   :  { %924 = vmatprep.mubr.bf16.mxu0 %v1851_v16 }
 0x33b   :  { %v2328_v46 = vpop.permute.xlu1 %669  ;;  %v2330_v47 = vpop.permute.xlu0 %654 }
 0x33e   :  { %1013 = vmatmul.mubr.bf16.gmra.mxu1 %v1853_v17 }
 0x33f   :  { %925 = vmatmul.mubr.bf16.gmra.mxu0 %v1854_v18  ;;  %1444 = vmatprep.mubr.msk.bf16.mxu1 %vm843_vm3, %v1855_v19  ;;  %v2332_v48 = vpop.permute.xlu1 %659  ;;  %v2334_v49 = vpop.permute.xlu0 %644 }
 0x340   :  { %932 = vmatprep.mubr.bf16.mxu0 %v1857_v20 }
 0x343   :  { %v2336_v50 = vpop.permute.xlu1 %649  ;;  %v635_v51 = vpop.permute.xlu0 %634 }
 0x346   :  { %1021 = vmatmul.mubr.bf16.gmra.mxu1 %v1859_v21 }
 0x347   :  { %933 = vmatmul.mubr.bf16.gmra.mxu0 %v1860_v22  ;;  %1445 = vmatprep.mubr.msk.bf16.mxu1 %vm843_vm3, %v1861_v23  ;;  %v640_v53 = vpop.permute.xlu1 %639  ;;  %v625_v56 = vpop.permute.xlu0 %624 }
 0x348   :  { %940 = vmatprep.mubr.bf16.mxu0 %v1863_v24 }
 0x34b   :  { %v630_v62 = vpop.permute.xlu1 %629 }
 0x34e   :  { %1029 = vmatmul.mubr.bf16.gmra.mxu1 %v1865_v25 }
 0x34f   :  { %941 = vmatmul.mubr.bf16.gmra.mxu0 %v1866_v26  ;;  %1446 = vmatprep.mubr.msk.bf16.mxu1 %vm843_vm3, %v1867_v27 }
 0x350   :  { %948 = vmatprep.mubr.bf16.mxu0 %v1869_v28 }
 0x356   :  { %1037 = vmatmul.mubr.bf16.gmra.mxu1 %v1871_v30 }
 0x357   :  { %949 = vmatmul.mubr.bf16.gmra.mxu0 %v1872_v31  ;;  %1447 = vmatprep.mubr.msk.bf16.mxu1 %vm843_vm3, %v1873_v32 }
 0x358   :  { %956 = vmatprep.mubr.bf16.mxu0 %v1438_v33 }
 0x35e   :  { %1045 = vmatmul.mubr.bf16.gmra.mxu1 %v1876_v35 }
 0x35f   :  { %957 = vmatmul.mubr.bf16.gmra.mxu0 %v1437_v36  ;;  %1448 = vmatprep.mubr.msk.bf16.mxu1 %vm843_vm3, %v1440_v37 }
 0x360   :  { %1594 = vmatprep.mubr.msk.bf16.mxu0 %vm1188_vm4, %v1880_v42 }
 0x366   :  { %1053 = vmatmul.mubr.bf16.gmra.mxu1 %v1439_v38 }
 0x3e7   :  { %v1489_v52 = vpop.f32.mrf.mxu0 }
 0x3e9   :  { %v1490_v54 = vpop.f32.mrf.mxu0 }
 0x3ea   :  { %v1491_v55 = vadd.f32 %v1490_v54, %v1489_v52 }
 0x3eb   :  { %v1492_v57 = vpop.f32.mrf.mxu0 }
 0x3ec   :  { %v903_v58 = vadd.f32 %v1491_v55, %v625_v56 }
 0x3ed   :  { %v1493_v59 = vpop.f32.mrf.mxu0 }
 0x3ee   :  { %v1494_v60 = vadd.f32 %v1493_v59, %v1492_v57  ;;  %v998_v61 = vpop.f32.mrf.mxu1 }
 0x3ef   :  { %v999_v63 = vadd.f32 %v998_v61, %v903_v58  ;;  %v1495_v0 = vpop.f32.mrf.mxu0 }
 0x3f0   :  { %v1000_v2 = vpop.f32.mrf.mxu1  ;;  %v906_v3 = vadd.f32 %v1494_v60, %v630_v62 }
 0x3f1   :  { %v1496_v4 = vpop.f32.mrf.mxu0  ;;  %v1060_v6 = vmax.f32 %v999_v63, 0.0 }
 0x3f2   :  { %v1497_v5 = vadd.f32 %v1496_v4, %v1495_v0  ;;  %v1001_v7 = vpop.f32.mrf.mxu1 }
 0x3f3   :  { %v1002_v8 = vadd.f32 %v1001_v7, %v906_v3  ;;  %v1498_v9 = vpop.f32.mrf.mxu0 }
 0x3f4   :  { %v1003_v10 = vpop.f32.mrf.mxu1  ;;  %v911_v11 = vadd.f32 %v1497_v5, %v635_v51 }
 0x3f5   :  { %v1061_v12 = vmax.f32 %v1002_v8, 0.0  ;;  %v1499_v13 = vpop.f32.mrf.mxu0 }
 0x3f6   :  { %v1500_v1 = vadd.f32 %v1499_v13, %v1498_v9  ;;  %v1006_v14 = vpop.f32.mrf.mxu1 }
 0x3f7   :  { %v2338_v15 = vpack.c.bf16 %v1061_v12, %v1060_v6  ;;  %v1007_v16 = vadd.f32 %v1006_v14, %v911_v11  ;;  %v2340_v17 = vpop.f32.mrf.mxu0 }
 0x3f8   :  { %v1008_v18 = vpop.f32.mrf.mxu1  ;;  %v914_v19 = vadd.f32 %v1500_v1, %v640_v53 }
 0x3f9   :  { %v2342_v20 = vpop.f32.mrf.mxu0  ;;  %v1062_v25 = vmax.f32 %v1007_v16, 0.0 }
 0x3fa   :  { %v1009_v21 = vpop.f32.mrf.mxu1 }
 0x3fb   :  { %v1010_v22 = vadd.f32 %v1009_v21, %v914_v19  ;;  %v2344_v23 = vpop.f32.mrf.mxu0 }
 0x3fc   :  { %v1011_v24 = vpop.f32.mrf.mxu1 }
 0x3fd   :  { %v1063_v26 = vmax.f32 %v1010_v22, 0.0  ;;  %v2346_v27 = vpop.f32.mrf.mxu0 }
 0x3fe   :  { %v2348_v28 = vpop.f32.mrf.mxu1 }
 0x3ff   :  { %v2350_v29 = vpack.c.bf16 %v1063_v26, %v1062_v25  ;;  %v1507_v30 = vpop.f32.mrf.mxu0 }
 0x400   :  { %v1016_v31 = vpop.f32.mrf.mxu1 }
 0x401   :  { %v1508_v32 = vpop.f32.mrf.mxu0 }
 0x402   :  { %v2352_v33 = vpop.f32.mrf.mxu1 }
 0x403   :  { %v1510_v34 = vpop.f32.mrf.mxu0 }
 0x404   :  { %v1019_v35 = vpop.f32.mrf.mxu1 }
 0x405   :  { %v1511_v36 = vpop.f32.mrf.mxu0 }
 0x406   :  { %v2354_v37 = vpop.f32.mrf.mxu1 }
 0x407   :  { %v1513_v38 = vpop.f32.mrf.mxu0 }
 0x408   :  { %v1024_v42 = vpop.f32.mrf.mxu1 }
 0x409   :  { %v1514_v51 = vpop.f32.mrf.mxu0 }
 0x40a   :  { %v2356_v52 = vpop.f32.mrf.mxu1 }
 0x40b   :  { %v1516_v53 = vpop.f32.mrf.mxu0 }
 0x40c   :  { %v1027_v54 = vpop.f32.mrf.mxu1 }
 0x40d   :  { %v1517_v55 = vpop.f32.mrf.mxu0 }
 0x40e   :  { %v2358_v56 = vpop.f32.mrf.mxu1  ;;  %v1518_v31 = vadd.f32 %v1517_v55, %v1516_v53 }
 0x40f   :  { %v1519_v57 = vpop.f32.mrf.mxu0 }
 0x410   :  { %v1032_v58 = vpop.f32.mrf.mxu1 }
 0x411   :  { %v1520_v59 = vpop.f32.mrf.mxu0 }
 0x412   :  { %v1033_v60 = vpop.f32.mrf.mxu1  ;;  %v1521_v21 = vadd.f32 %v1520_v59, %v1519_v57  ;;  %v938_v57 = vadd.f32 %v1518_v31, %v2328_v46 }
 0x413   :  { %v1522_v61 = vpop.f32.mrf.mxu0 }
 0x414   :  { %v1035_v62 = vpop.f32.mrf.mxu1 }
 0x415   :  { %v1523_v63 = vpop.f32.mrf.mxu0  ;;  %v1515_v62 = vadd.f32 %v1514_v51, %v1513_v38  ;;  %v1506_v38 = vadd.f32 %v2346_v27, %v2344_v23 }
 0x416   :  { %v1038_v0 = vpop.f32.mrf.mxu1  ;;  %v1524_v1 = vadd.f32 %v1523_v63, %v1522_v61  ;;  %v943_v61 = vadd.f32 %v1521_v21, %v2321_v43 }
 0x417   :  { %v1525_v2 = vpop.f32.mrf.mxu0  ;;  %v935_v53 = vadd.f32 %v1515_v62, %v2326_v45  ;;  %v1503_v45 = vadd.f32 %v2342_v20, %v2340_v17 }
 0x418   :  { %v1040_v3 = vpop.f32.mrf.mxu1  ;;  %v946_v35 = vadd.f32 %v1524_v1, %v2324_v44  ;;  %v1039_v44 = vadd.f32 %v1038_v0, %v943_v61 }
 0x419   :  { %v1526_v4 = vpop.f32.mrf.mxu0 }
 0x41a   :  { %v1041_v5 = vpop.f32.mrf.mxu1  ;;  %v1527_v6 = vadd.f32 %v1526_v4, %v1525_v2  ;;  %v1512_v2 = vadd.f32 %v1511_v36, %v1510_v34  ;;  %v1034_v34 = vadd.f32 %v1033_v60, %v938_v57  ;;  %v1070_v0 = vmax.f32 %v1039_v44, 0.0 }
 0x41b   :  { %v1528_v7 = vpop.f32.mrf.mxu0 }
 0x41c   :  { %v1043_v8 = vpop.f32.mrf.mxu1  ;;  %v951_v22 = vadd.f32 %v1527_v6, %v2314_v40  ;;  %v1042_v40 = vadd.f32 %v1041_v5, %v946_v35  ;;  %v930_v43 = vadd.f32 %v1512_v2, %v2332_v48  ;;  %v922_v48 = vadd.f32 %v1506_v38, %v2336_v50 }
 0x41d   :  { %v1529_v9 = vpop.f32.mrf.mxu0  ;;  %v1069_v27 = vmax.f32 %v1034_v34, 0.0  ;;  %v919_v5 = vadd.f32 %v1503_v45, %v2334_v49  ;;  %v1881_v49 = vld [vmem:[%s2431_s7 + $0x8] sm:$0xff]  }
 0x41e   :  { %v1530_v10 = vadd.f32 %v1529_v9, %v1528_v7  ;;  %v1046_v11 = vpop.f32.mrf.mxu1  ;;  %v1509_v7 = vadd.f32 %v1508_v32, %v1507_v30  ;;  %v1071_v36 = vmax.f32 %v1042_v40, 0.0  ;;  %v1031_v32 = vadd.f32 %v2358_v56, %v935_v53 }
 0x41f   :  { %v1531_v12 = vpop.f32.mrf.mxu0  ;;  %v1047_v63 = vadd.f32 %v1046_v11, %v951_v22  ;;  %v1026_v23 = vadd.f32 %v2356_v52, %v930_v43  ;;  %v1018_v17 = vadd.f32 %v2352_v33, %v922_v48  ;;  %v1015_v56 = vadd.f32 %v2348_v28, %v919_v5  ;;  %v1882_v28 = vld [vmem:[%s2431_s7 + $0x10] sm:$0xff]   ;;  %v1884_v33 = vld [vmem:[%s2431_s7 + $0x20] sm:$0xff]  }
 0x420   :  { %v1048_v13 = vpop.f32.mrf.mxu1  ;;  %v954_v16 = vadd.f32 %v1530_v10, %v2316_v41  ;;  %v927_v30 = vadd.f32 %v1509_v7, %v2330_v47  ;;  %v1091_v60 = vpack.c.bf16 %v1071_v36, %v1070_v0  ;;  %v1068_v11 = vmax.f32 %v1031_v32, 0.0 }
 0x421   :  { %v1532_v14 = vpop.f32.mrf.mxu0  ;;  %v1072_v55 = vmax.f32 %v1047_v63, 0.0  ;;  %v1067_v47 = vmax.f32 %v1026_v23, 0.0  ;;  %v1065_v50 = vmax.f32 %v1018_v17, 0.0 }
 0x422   :  { %v1533_v18 = vadd.f32 %v1532_v14, %v1531_v12  ;;  %v1049_v19 = vpop.f32.mrf.mxu1  ;;  %v1023_v10 = vadd.f32 %v2354_v37, %v927_v30  ;;  %v1090_v20 = vpack.c.bf16 %v1069_v27, %v1068_v11  ;;  %v1064_v12 = vmax.f32 %v1015_v56, 0.0  ;;  %v1886_v56 = vld [vmem:[%s2432_s9] sm:$0x1f]  }
 0x423   :  { %v1534_v24 = vpop.f32.mrf.mxu0  ;;  %v1050_v42 = vadd.f32 %v1049_v19, %v954_v16  ;;  %v1912_v37 = vmov 0.0   ;;  %v1158_v16 = vpop.permute.xlu0 %1157 }
 0x424   :  { %v1051_v25 = vpop.f32.mrf.mxu1  ;;  %v959_v26 = vadd.f32 %v1533_v18, %v2312_v39  ;;  %v1066_v6 = vmax.f32 %v1023_v10, 0.0  ;;  %v1088_v13 = vpack.c.bf16 %v1065_v50, %v1064_v12 }
 0x425   :  { %v1535_v54 = vpop.f32.mrf.mxu0  ;;  %v1073_v59 = vmax.f32 %v1050_v42, 0.0  ;;  %v1148_v25 = vpop.permute.xlu1 %1147 }
 0x426   :  { %v1054_v58 = vpop.f32.mrf.mxu1  ;;  %v1089_v52 = vpack.c.bf16 %v1067_v47, %v1066_v6 }
 0x427   :  { %v1055_v41 = vadd.f32 %v1054_v58, %v959_v26  ;;  %v1092_v9 = vpack.c.bf16 %v1073_v59, %v1072_v55  ;;  %v1153_v22 = vpop.permute.xlu0 %1152 }
 0x428   :  { %v1056_v3 = vpop.f32.mrf.mxu1 }
 0x429   :  { %v1074_v4 = vmax.f32 %v1055_v41, 0.0  ;;  %v1138_v58 = vpop.permute.xlu1 %1137 }
 0x42a   :  { %v1057_v39 = vpop.f32.mrf.mxu1 }
 0x42b   :  { %v1093_v8 = vpack.c.bf16 %v1074_v4, %v1074_v4  ;;  %v1143_v35 = vpop.permute.xlu0 %1142 }
 0x42c   :  { %v1058_v51 = vpop.f32.mrf.mxu1 }
 0x42d   :  { %1622 = vmatprep.subr.msk.bf16.mxu0 %vm365_vm2, %v1093_v8  ;;  %v1208_v46 = vsel %vm365_vm2, %v1093_v8, 0  ;;  %v1128_v7 = vpop.permute.xlu1 %1127 }
 0x42e   :  { %1579 = vmatpush3.bf16.msra.mxu0 %v1208_v46 }
 0x42f   :  { %1580 = vmatprep.subr.bf16.mxu0 %v1092_v9  ;;  %v1133_v3 = vpop.permute.xlu0 %1132 }
 0x431   :  { %v1118_v36 = vpop.permute.xlu1 %1117 }
 0x432   :  { %1581 = vmatpush3.bf16.msra.mxu0 %v1092_v9 }
 0x433   :  { %1582 = vmatprep.subr.bf16.mxu0 %v1091_v60  ;;  %v1123_v43 = vpop.permute.xlu0 %1122 }
 0x436   :  { %1583 = vmatpush3.bf16.msra.mxu0 %v1091_v60  ;;  %v1108_v60 = vpop.permute.xlu1 %1107 }
 0x437   :  { %1584 = vmatprep.subr.bf16.mxu0 %v1090_v20  ;;  %v1113_v0 = vpop.permute.xlu0 %1112 }
 0x43a   :  { %1585 = vmatpush3.bf16.msra.mxu0 %v1090_v20  ;;  %v1314_v6 = vpop.permute.xlu1 %1313 }
 0x43b   :  { %1586 = vmatprep.subr.bf16.mxu0 %v1089_v52 }
 0x43e   :  { %1587 = vmatpush3.bf16.msra.mxu0 %v1089_v52 }
 0x43f   :  { %1588 = vmatprep.subr.bf16.mxu0 %v1088_v13 }
 0x442   :  { %1589 = vmatpush3.bf16.msra.mxu0 %v1088_v13  ;;  %v1319_v13 = vpop.permute.xlu0 %1318 }
 0x443   :  { %1590 = vmatprep.subr.bf16.mxu0 %v2350_v29 }
 0x446   :  { %1591 = vmatpush3.bf16.msra.mxu0 %v2350_v29  ;;  %v1883_v29 = vld [vmem:[%s2431_s7 + $0x18] sm:$0xff]  }
 0x447   :  { %1592 = vmatprep.subr.bf16.mxu0 %v2338_v15 }
 0x44a   :  { %1593 = vmatpush3.bf16.msra.mxu0 %v2338_v15  ;;  %v1885_v15 = vld [vmem:[%s2431_s7 + $0x28] ss:$0 sps:$4 sm:$0x33]  }
 0x44b   :  { %1606 = vmatprep.subr.bf16.mxu0 %v1912_v37 }
 0x44d   :  { %1595 = vmatmul.mubr.msk.bf16.vlgmr.msra.gmra.mxu0 %vm1188_vm4, %v1881_v49 }
 0x44e   :  { %1598 = vmatprep.mubr.msk.bf16.mxu0 %vm1188_vm4, %v1882_v28 }
 0x455   :  { %1599 = vmatmul.mubr.msk.bf16.gmra.mxu0 %vm1188_vm4, %v1883_v29 }
 0x456   :  { %1602 = vmatprep.mubr.msk.bf16.mxu0 %vm1188_vm4, %v1884_v33 }
 0x45d   :  { %1603 = vmatmul.mubr.msk.bf16.gmra.mxu0 %vm1188_vm4, %v1885_v15 }
 0x45e   :  { %1618 = vmatprep.mubr.msk.bf16.mxu0 %vm1913_vm5, %v1912_v37 }
 0x50d   :  { %v1596_v1 = vpop.f32.mrf.mxu0 }
 0x50e   :  { %v1253_v30 = vadd.f32 %v1596_v1, %v1118_v36 }
 0x50f   :  { %v1244_v14 = vpop.f32.mrf.mxu0 }
 0x510   :  { %v1292_v5 = vmax.f32 %v1253_v30, 0.0  ;;  %v1245_v10 = vadd.f32 %v1244_v14, %v1108_v60 }
 0x511   :  { %v1597_v18 = vpop.f32.mrf.mxu0 }
 0x512   :  { %v1256_v9 = vadd.f32 %v1597_v18, %v1123_v43  ;;  %v1290_v47 = vmax.f32 %v1245_v10, 0.0 }
 0x513   :  { %v1247_v19 = vpop.f32.mrf.mxu0 }
 0x514   :  { %v1293_v48 = vmax.f32 %v1256_v9, 0.0  ;;  %v1248_v23 = vadd.f32 %v1247_v19, %v1113_v0 }
 0x515   :  { %v1600_v21 = vpop.f32.mrf.mxu0 }
 0x516   :  { %v1269_v39 = vadd.f32 %v1600_v21, %v1138_v58  ;;  %v1304_v11 = vpack.c.bf16 %v1293_v48, %v1292_v5  ;;  %v1291_v17 = vmax.f32 %v1248_v23, 0.0 }
 0x517   :  { %v1260_v24 = vpop.f32.mrf.mxu0 }
 0x518   :  { %v1296_v51 = vmax.f32 %v1269_v39, 0.0  ;;  %v1261_v34 = vadd.f32 %v1260_v24, %v1128_v7  ;;  %v1303_v20 = vpack.c.bf16 %v1291_v17, %v1290_v47 }
 0x519   :  { %v1601_v26 = vpop.f32.mrf.mxu0 }
 0x51a   :  { %v1272_v40 = vadd.f32 %v1601_v26, %v1143_v35  ;;  %v1294_v32 = vmax.f32 %v1261_v34, 0.0 }
 0x51b   :  { %v1263_v31 = vpop.f32.mrf.mxu0 }
 0x51c   :  { %v1297_v55 = vmax.f32 %v1272_v40, 0.0  ;;  %v1264_v8 = vadd.f32 %v1263_v31, %v1133_v3 }
 0x51d   :  { %v1604_v42 = vpop.f32.mrf.mxu0 }
 0x51e   :  { %v1285_v54 = vadd.f32 %v1604_v42, %v1158_v16  ;;  %v1306_v46 = vpack.c.bf16 %v1297_v55, %v1296_v51  ;;  %v1295_v45 = vmax.f32 %v1264_v8, 0.0 }
 0x51f   :  { %v1276_v62 = vpop.f32.mrf.mxu0 }
 0x520   :  { %v1300_v61 = vmax.f32 %v1285_v54, 0.0  ;;  %v1277_v2 = vadd.f32 %v1276_v62, %v1148_v25  ;;  %v1305_v27 = vpack.c.bf16 %v1295_v45, %v1294_v32 }
 0x521   :  { %v1605_v63 = vpop.f32.mrf.mxu0 }
 0x522   :  { %v1308_v41 = vpack.c.bf16 %v1300_v61, %v1300_v61  ;;  %v1298_v53 = vmax.f32 %v1277_v2, 0.0 }
 0x523   :  { %v1279_v57 = vpop.f32.mrf.mxu0 }
 0x524   :  { %v1280_v59 = vadd.f32 %v1279_v57, %v1153_v22  ;;  %v1332_v4 = vsel %vm1330_vm6, %v1308_v41, 0 }
 0x525   :  { %1607 = vmatpush3.bf16.msra.mxu0 %v1332_v4 }
 0x526   :  { %v1299_v44 = vmax.f32 %v1280_v59, 0.0  ;;  %1608 = vmatprep.subr.bf16.mxu0 %v1912_v37 }
 0x528   :  { %v1307_v38 = vpack.c.bf16 %v1299_v44, %v1298_v53 }
 0x52a   :  { %1609 = vmatpush3.bf16.msra.mxu0 %v1307_v38 }
 0x52b   :  { %1610 = vmatprep.subr.bf16.mxu0 %v1912_v37 }
 0x52e   :  { %1611 = vmatpush3.bf16.msra.mxu0 %v1306_v46 }
 0x52f   :  { %1612 = vmatprep.subr.bf16.mxu0 %v1912_v37 }
 0x532   :  { %1613 = vmatpush3.bf16.msra.mxu0 %v1305_v27 }
 0x533   :  { %1614 = vmatprep.subr.bf16.mxu0 %v1912_v37 }
 0x536   :  { %1615 = vmatpush3.bf16.msra.mxu0 %v1304_v11 }
 0x537   :  { %1616 = vmatprep.subr.bf16.mxu0 %v1912_v37 }
 0x53a   :  { %1617 = vmatpush3.bf16.msra.mxu0 %v1303_v20 }
 0x53d   :  { %1619 = vmatmul.mubr.msk.bf16.vlgmr.msra.gmra.mxu0 %vm1326_vm7, %v1886_v56 }
 0x5fd   :  { %v1368_v50 = vpop.f32.mrf.mxu0 }
 0x5fe   :  { %v1369_v52 = vadd.f32 %v1368_v50, %v1314_v6 }
 0x5ff   :  { %v1620_v12 = vpop.f32.mrf.mxu0 }
 0x600   :  { %1375 = vst [vmem:[%s2433_s11] sm:$0xff] %v1369_v52 }
 0x601   :  { %v1371_v49 = vpop.f32.mrf.mxu0 }
 0x602   :  { %v1372_v28 = vadd.f32 %v1371_v49, %v1319_v13 }
 0x603   :  { %v1621_v29 = vpop.f32.mrf.mxu0 }
 0x604   :  { %1376 = vst [vmem:[%s2433_s11 + $0x8] sm:$0x3] %v1372_v28 }

</bundles_post_ra>
